<compile_context>
chip_gen: v7x
topology: tpu7x:2x2x1
jax: 0.10.0
libtpu: 0.0.40
codegen_flags: <defaults>
</compile_context>

<pallas_src>
import functools

import jax
import jax.numpy as jnp
from jax.experimental import pallas as pl
from jax.experimental.pallas import tpu as pltpu  # noqa: F401  (no scratch needed at this size)


# ------------------------------ fused kernel ------------------------------- #

def _e2e_fused_kernel(*refs, B, T, I, H, L, start, Lfc):
    """Entire E2E_Model forward in one grid-less pallas_call.

    refs layout:
      [0]             x_ref   (B, T*I)   raw input, time-major inside each row
      [1 .. 1+4L)     per layer: wstep, whh_blk, bgx, bn
                        wstep   (2*d_in, 6H)  step-aligned input projection,
                                fwd-input rows on top / bwd-input rows below,
                                gate columns [r_f r_b z_f z_b n_f n_b]
                        whh_blk (2H, 6H)      block-diagonal recurrent weights
                        bgx     (1, 6H)       bih + bhh(r,z) folded (+ folded
                                              input-Linear bias for layer 0)
                        bn      (1, 2H)       bhh_n for [f | b]
      [1+4L]          wof_ref (1, H)     output weights for the fwd half
      [2+4L]          wob_ref (1, H)     output weights for the bwd half
      [3+4L]          bout_ref (1, 1)
      [4+4L]          o_ref   (B, Lfc)   kernel output
    """
    H2, H4, H6 = 2 * H, 4 * H, 6 * H
    x_ref = refs[0]
    layer_refs = refs[1:1 + 4 * L]
    wof_ref = refs[1 + 4 * L]
    wob_ref = refs[2 + 4 * L]
    bout_ref = refs[3 + 4 * L]
    o_ref = refs[4 + 4 * L]

    xv = x_ref[...]                                    # (B, T*I)
    states = None                                      # prev layer per-step [h_f|h_b]

    # TODO(synk): rnn_dropout_ratio between GRU layers is a train-time no-op
    # (ratio 0.0 / eval mode) and is omitted.
    for l in range(L):
        wstep_ref, whh_ref, bgx_ref, bn_ref = layer_refs[4 * l:4 * (l + 1)]
        wstep = wstep_ref[...]
        whh = whh_ref[...]
        bgx = bgx_ref[...]
        bn = bn_ref[...]

        # ---- hoisted, step-aligned input-side gate projection (independent
        #      of h -> off the serial critical path).  One small matmul per
        #      step produces all 6 gate pre-activations for BOTH directions
        #      in the final column order, so no per-step gate shuffles. ----
        gx_steps = []
        for s in range(T):
            sb = T - 1 - s
            if l == 0:
                # input Linear already folded into wstep (K = 2*I)
                pair = jnp.concatenate(
                    [xv[:, s * I:(s + 1) * I], xv[:, sb * I:(sb + 1) * I]],
                    axis=1)                                        # (B, 2I)
            else:
                # fwd direction consumes time s, bwd consumes time T-1-s;
                # states[t] holds [h_f(t) | h_b(T-1-t)] of the previous layer.
                pair = jnp.concatenate(
                    [states[s][:, 0:H], states[sb][:, H:H2],       # seq(s)
                     states[sb][:, 0:H], states[s][:, H:H2]],      # seq(T-1-s)
                    axis=1)                                        # (B, 4H)
            gx_steps.append(
                jnp.dot(pair, wstep, preferred_element_type=jnp.float32) + bgx)

        # ---- serial recurrence: ONE (B,2H)x(2H,6H) matmul, ONE 128-lane
        #      sigmoid and ONE 64-lane tanh per step for both directions ----
        h = jnp.zeros((B, H2), jnp.float32)            # [h_f | h_b]
        states = []
        for s in range(T):
            gh = jnp.dot(h, whh, preferred_element_type=jnp.float32)   # (B, 6H)
            gx = gx_steps[s]
            rz = jax.nn.sigmoid(gx[:, 0:H4] + gh[:, 0:H4])             # r_f r_b z_f z_b
            r = rz[:, 0:H2]
            z = rz[:, H2:H4]
            n = jnp.tanh(gx[:, H4:H6] + r * (gh[:, H4:H6] + bn))       # n_f n_b
            h = n + z * (h - n)                       # == (1 - z) * n + z * h
            states.append(h)

    # ---- output Linear + sigmoid on the [start, start+Lfc) window only.
    #      N=1 -> VPU broadcast-multiply + lane reduction (no MXU), then a
    #      single lane-dense (B, Lfc) store. ----
    wof = wof_ref[...]                                 # (1, H)
    wob = wob_ref[...]                                 # (1, H)
    cols = []
    for j in range(Lfc):
        tau = start + j
        y_f = states[tau][:, 0:H]                      # h_f(tau)     (last layer)
        y_b = states[T - 1 - tau][:, H:H2]             # h_b(tau)     (last layer)
        cols.append(jnp.sum(y_f * wof + y_b * wob, axis=1, keepdims=True))
    o_ref[...] = jax.nn.sigmoid(jnp.concatenate(cols, axis=1) + bout_ref[...])


# ------------------------------ JAX wrappers ------------------------------- #

def init_params(key, cfg):
    I, R, H, L, O = (cfg["input_size"], cfg["rnn_input_size"],
                     cfg["rnn_hidden_size"], cfg["rnn_layer"],
                     cfg["output_size"])

    def u(k, shape, fan):
        bound = 1.0 / float(fan) ** 0.5
        return jax.random.uniform(k, shape, jnp.float32, -bound, bound)

    n_keys = 4 + L * 2 * 4
    keys = list(jax.random.split(key, n_keys))
    ki = iter(keys)

    params = {
        "w_in": u(next(ki), (I, R), I),
        "b_in": u(next(ki), (R,), I),
        "w_out": u(next(ki), (2 * H, O), 2 * H),
        "b_out": u(next(ki), (O,), 2 * H),
        "gru": [],
    }
    for layer in range(L):
        d_in = R if layer == 0 else 2 * H
        layer_p = {}
        for d in ("f", "b"):
            layer_p["wih_" + d] = u(next(ki), (d_in, 3 * H), H)
            layer_p["whh_" + d] = u(next(ki), (H, 3 * H), H)
            layer_p["bih_" + d] = u(next(ki), (3 * H,), H)
            layer_p["bhh_" + d] = u(next(ki), (3 * H,), H)
        params["gru"].append(layer_p)
    return params


def prepare_fused_params(params, cfg):
    """Host-side weight packing (done once, outside the kernel).

    * folds the input Linear into layer-0's projection,
    * folds bih + bhh(r,z) into the hoisted gate bias,
    * packs fwd|bwd weights into step-aligned / block-diagonal fused matrices
      with gate columns ordered [r_f r_b z_f z_b n_f n_b].
    """
    HIGH = jax.lax.Precision.HIGHEST
    H = cfg["rnn_hidden_size"]
    L = cfg["rnn_layer"]
    H2 = 2 * H

    def pack_cols(mf, mb):
        # (d,3H) fwd + (d,3H) bwd (PyTorch gate order [r,z,n]) -> (2d, 6H)
        # block-structured matrix: fwd rows feed fwd gate columns only, bwd
        # rows feed bwd gate columns only; columns [r_f r_b z_f z_b n_f n_b].
        d = mf.shape[0]
        w = jnp.zeros((2 * d, 6 * H), jnp.float32)
        w = w.at[0:d, 0:H].set(mf[:, 0:H])                       # r_f
        w = w.at[0:d, 2 * H:3 * H].set(mf[:, H:2 * H])           # z_f
        w = w.at[0:d, 4 * H:5 * H].set(mf[:, 2 * H:3 * H])       # n_f
        w = w.at[d:2 * d, H:2 * H].set(mb[:, 0:H])               # r_b
        w = w.at[d:2 * d, 3 * H:4 * H].set(mb[:, H:2 * H])       # z_b
        w = w.at[d:2 * d, 5 * H:6 * H].set(mb[:, 2 * H:3 * H])   # n_b
        return w

    def pack_bias(bf, bb):
        return jnp.concatenate(
            [bf[0:H], bb[0:H], bf[H:2 * H], bb[H:2 * H],
             bf[2 * H:3 * H], bb[2 * H:3 * H]]).reshape(1, 6 * H)

    args = []
    for l in range(L):
        p = params["gru"][l]
        wih_f, wih_b = p["wih_f"], p["wih_b"]
        # bih (all gates) + bhh for r,z folded into the hoisted gx bias;
        # bhh_n stays separate (must remain inside the r*(...) term).
        bgx_f = p["bih_f"] + jnp.concatenate(
            [p["bhh_f"][:2 * H], jnp.zeros((H,), jnp.float32)])
        bgx_b = p["bih_b"] + jnp.concatenate(
            [p["bhh_b"][:2 * H], jnp.zeros((H,), jnp.float32)])
        if l == 0:
            # Fold the input Linear (w_in, b_in) into layer 0's projection.
            wih_f = jnp.dot(params["w_in"], wih_f, precision=HIGH)
            wih_b = jnp.dot(params["w_in"], wih_b, precision=HIGH)
            bgx_f = bgx_f + jnp.dot(params["b_in"], p["wih_f"], precision=HIGH)
            bgx_b = bgx_b + jnp.dot(params["b_in"], p["wih_b"], precision=HIGH)
        wstep = pack_cols(wih_f, wih_b)                 # (2*d_in, 6H)
        whh_blk = pack_cols(p["whh_f"], p["whh_b"])     # (2H, 6H) block-diag
        bgx = pack_bias(bgx_f, bgx_b)                   # (1, 6H)
        bn = jnp.concatenate([p["bhh_f"][2 * H:], p["bhh_b"][2 * H:]]
                             ).reshape(1, H2)           # (1, 2H)
        args += [wstep, whh_blk, bgx, bn]

    wof = params["w_out"][0:H, 0].reshape(1, H)
    wob = params["w_out"][H:H2, 0].reshape(1, H)
    bout = params["b_out"].reshape(1, 1)
    args += [wof, wob, bout]
    return args


def e2e_forward(x, fused, cfg):
    """x: (B, time_step, input_size) -> (B, fc_length), one fused pallas_call."""
    B, T, I = x.shape
    H = cfg["rnn_hidden_size"]
    L = cfg["rnn_layer"]
    start = cfg["dummy_length_start"]
    Lfc = cfg["fc_length"]

    x2 = x.reshape(B, T * I)          # free row-major reshape (no transpose op)

    kernel = functools.partial(_e2e_fused_kernel, B=B, T=T, I=I, H=H, L=L,
                               start=start, Lfc=Lfc)
    return pl.pallas_call(
        kernel,
        out_shape=jax.ShapeDtypeStruct((B, Lfc), jnp.float32),
    )(x2, *fused)


# ----------------------------- pure-JAX reference --------------------------- #

def e2e_reference(x, params, cfg):
    P = jax.lax.Precision.HIGHEST
    B, T, _ = x.shape
    H = cfg["rnn_hidden_size"]
    L = cfg["rnn_layer"]
    seq = jnp.dot(x, params["w_in"], precision=P) + params["b_in"]    # (B, T, R)
    for l in range(L):
        p = params["gru"][l]
        outs = []
        for d in ("f", "b"):
            wih, whh = p["wih_" + d], p["whh_" + d]
            bih, bhh = p["bih_" + d], p["bhh_" + d]
            xs = seq[:, ::-1, :] if d == "b" else seq
            h = jnp.zeros((B, H), jnp.float32)
            ys = []
            for t in range(T):
                gx = jnp.dot(xs[:, t, :], wih, precision=P) + bih
                gh = jnp.dot(h, whh, precision=P) + bhh
                r = jax.nn.sigmoid(gx[:, :H] + gh[:, :H])
                z = jax.nn.sigmoid(gx[:, H:2 * H] + gh[:, H:2 * H])
                n = jnp.tanh(gx[:, 2 * H:] + r * gh[:, 2 * H:])
                h = (1.0 - z) * n + z * h
                ys.append(h)
            y = jnp.stack(ys, axis=1)
            if d == "b":
                y = y[:, ::-1, :]
            outs.append(y)
        seq = jnp.concatenate(outs, axis=-1)
    start = cfg["dummy_length_start"]
    end = cfg["time_step"] - cfg["dummy_length_end"]
    ydec = seq[:, start:end, :]
    dec = jax.nn.sigmoid(jnp.dot(ydec, params["w_out"], precision=P)
                         + params["b_out"])
    return jnp.squeeze(dec, 2)


# --------------------------------- main ------------------------------------ #

if __name__ == "__main__":
    cfg = dict(
        input_size=4,
        rnn_input_size=32,
        rnn_hidden_size=32,
        rnn_layer=2,
        output_size=1,
        dummy_length_start=2,
        eval_length=4,
        overlap_length=2,
        dummy_length_end=2,
        rnn_dropout_ratio=0.0,
    )
    cfg["time_step"] = (cfg["dummy_length_start"] + cfg["eval_length"]
                        + cfg["overlap_length"] + cfg["dummy_length_end"])
    cfg["fc_length"] = cfg["eval_length"] + cfg["overlap_length"]

    key = jax.random.PRNGKey(0)
    k_params, k_x = jax.random.split(key)
    params = init_params(k_params, cfg)
    fused = prepare_fused_params(params, cfg)

    batch = 2
    x = jax.random.normal(k_x, (batch, cfg["time_step"], cfg["input_size"]),
                          jnp.float32)

    fwd = jax.jit(functools.partial(e2e_forward, cfg=cfg))
    out = jax.block_until_ready(fwd(x, fused))
    assert out.shape == (batch, cfg["fc_length"]), out.shape
    assert bool(jnp.all(jnp.isfinite(out)))

    # Numerical check against a pure-JAX reference of the PyTorch module.
    ref = jax.block_until_ready(e2e_reference(x, params, cfg))
    assert bool(jnp.allclose(out, ref, atol=2e-4, rtol=1e-3)), (
        "max abs diff = %g" % float(jnp.max(jnp.abs(out - ref))))

    print("KERNEL_OK")
</pallas_src>

<mosaic_0001>
module attributes {stable_mosaic.version = 11 : i64} {
  func.func @_e2e_fused_kernel(%arg0: memref<2x40xf32, #tpu.memory_space<vmem>>, %arg1: memref<8x192xf32, #tpu.memory_space<vmem>>, %arg2: memref<64x192xf32, #tpu.memory_space<vmem>>, %arg3: memref<1x192xf32, #tpu.memory_space<vmem>>, %arg4: memref<1x64xf32, #tpu.memory_space<vmem>>, %arg5: memref<128x192xf32, #tpu.memory_space<vmem>>, %arg6: memref<64x192xf32, #tpu.memory_space<vmem>>, %arg7: memref<1x192xf32, #tpu.memory_space<vmem>>, %arg8: memref<1x64xf32, #tpu.memory_space<vmem>>, %arg9: memref<1x32xf32, #tpu.memory_space<vmem>>, %arg10: memref<1x32xf32, #tpu.memory_space<vmem>>, %arg11: memref<1x1xf32, #tpu.memory_space<vmem>>, %arg12: memref<2x6xf32, #tpu.memory_space<vmem>>) attributes {dimension_semantics = [], scalar_prefetch = 0 : i64, scratch_operands = 0 : i64, tpu.core_type = #tpu.core_type<tc>} {
    %c0 = arith.constant 0 : index
    %c0_0 = arith.constant 0 : index
    %0 = vector.load %arg0[%c0, %c0_0] : memref<2x40xf32, #tpu.memory_space<vmem>>, vector<2x40xf32>
    %c0_1 = arith.constant 0 : index
    %c0_2 = arith.constant 0 : index
    %1 = vector.load %arg1[%c0_1, %c0_2] : memref<8x192xf32, #tpu.memory_space<vmem>>, vector<8x192xf32>
    %c0_3 = arith.constant 0 : index
    %c0_4 = arith.constant 0 : index
    %2 = vector.load %arg2[%c0_3, %c0_4] : memref<64x192xf32, #tpu.memory_space<vmem>>, vector<64x192xf32>
    %c0_5 = arith.constant 0 : index
    %c0_6 = arith.constant 0 : index
    %3 = vector.load %arg3[%c0_5, %c0_6] : memref<1x192xf32, #tpu.memory_space<vmem>>, vector<1x192xf32>
    %c0_7 = arith.constant 0 : index
    %c0_8 = arith.constant 0 : index
    %4 = vector.load %arg4[%c0_7, %c0_8] : memref<1x64xf32, #tpu.memory_space<vmem>>, vector<1x64xf32>
    %5 = vector.extract_strided_slice %0 {offsets = [0, 0], sizes = [2, 4], strides = [1, 1]} : vector<2x40xf32> to vector<2x4xf32>
    %6 = vector.extract_strided_slice %0 {offsets = [0, 36], sizes = [2, 4], strides = [1, 1]} : vector<2x40xf32> to vector<2x4xf32>
    %7 = tpu.concatenate %5, %6 in 1 : vector<2x4xf32>, vector<2x4xf32> -> vector<2x8xf32>
    %cst = arith.constant dense<0.000000e+00> : vector<2x192xf32>
    %8 = tpu.matmul %7, %1, %cst {dimension_numbers = #tpu.dot_dimension_numbers<[1], [0], [0], [1], [0, 0, 1, 1], [], []>} : vector<2x8xf32>, vector<8x192xf32>, vector<2x192xf32> -> vector<2x192xf32>
    %9 = vector.broadcast %3 : vector<1x192xf32> to vector<2x192xf32>
    %10 = arith.addf %8, %9 : vector<2x192xf32>
    %11 = vector.extract_strided_slice %0 {offsets = [0, 4], sizes = [2, 4], strides = [1, 1]} : vector<2x40xf32> to vector<2x4xf32>
    %12 = vector.extract_strided_slice %0 {offsets = [0, 32], sizes = [2, 4], strides = [1, 1]} : vector<2x40xf32> to vector<2x4xf32>
    %13 = tpu.concatenate %11, %12 in 1 : vector<2x4xf32>, vector<2x4xf32> -> vector<2x8xf32>
    %cst_9 = arith.constant dense<0.000000e+00> : vector<2x192xf32>
    %14 = tpu.matmul %13, %1, %cst_9 {dimension_numbers = #tpu.dot_dimension_numbers<[1], [0], [0], [1], [0, 0, 1, 1], [], []>} : vector<2x8xf32>, vector<8x192xf32>, vector<2x192xf32> -> vector<2x192xf32>
    %15 = vector.broadcast %3 : vector<1x192xf32> to vector<2x192xf32>
    %16 = arith.addf %14, %15 : vector<2x192xf32>
    %17 = vector.extract_strided_slice %0 {offsets = [0, 8], sizes = [2, 4], strides = [1, 1]} : vector<2x40xf32> to vector<2x4xf32>
    %18 = vector.extract_strided_slice %0 {offsets = [0, 28], sizes = [2, 4], strides = [1, 1]} : vector<2x40xf32> to vector<2x4xf32>
    %19 = tpu.concatenate %17, %18 in 1 : vector<2x4xf32>, vector<2x4xf32> -> vector<2x8xf32>
    %cst_10 = arith.constant dense<0.000000e+00> : vector<2x192xf32>
    %20 = tpu.matmul %19, %1, %cst_10 {dimension_numbers = #tpu.dot_dimension_numbers<[1], [0], [0], [1], [0, 0, 1, 1], [], []>} : vector<2x8xf32>, vector<8x192xf32>, vector<2x192xf32> -> vector<2x192xf32>
    %21 = vector.broadcast %3 : vector<1x192xf32> to vector<2x192xf32>
    %22 = arith.addf %20, %21 : vector<2x192xf32>
    %23 = vector.extract_strided_slice %0 {offsets = [0, 12], sizes = [2, 4], strides = [1, 1]} : vector<2x40xf32> to vector<2x4xf32>
    %24 = vector.extract_strided_slice %0 {offsets = [0, 24], sizes = [2, 4], strides = [1, 1]} : vector<2x40xf32> to vector<2x4xf32>
    %25 = tpu.concatenate %23, %24 in 1 : vector<2x4xf32>, vector<2x4xf32> -> vector<2x8xf32>
    %cst_11 = arith.constant dense<0.000000e+00> : vector<2x192xf32>
    %26 = tpu.matmul %25, %1, %cst_11 {dimension_numbers = #tpu.dot_dimension_numbers<[1], [0], [0], [1], [0, 0, 1, 1], [], []>} : vector<2x8xf32>, vector<8x192xf32>, vector<2x192xf32> -> vector<2x192xf32>
    %27 = vector.broadcast %3 : vector<1x192xf32> to vector<2x192xf32>
    %28 = arith.addf %26, %27 : vector<2x192xf32>
    %29 = vector.extract_strided_slice %0 {offsets = [0, 16], sizes = [2, 4], strides = [1, 1]} : vector<2x40xf32> to vector<2x4xf32>
    %30 = vector.extract_strided_slice %0 {offsets = [0, 20], sizes = [2, 4], strides = [1, 1]} : vector<2x40xf32> to vector<2x4xf32>
    %31 = tpu.concatenate %29, %30 in 1 : vector<2x4xf32>, vector<2x4xf32> -> vector<2x8xf32>
    %cst_12 = arith.constant dense<0.000000e+00> : vector<2x192xf32>
    %32 = tpu.matmul %31, %1, %cst_12 {dimension_numbers = #tpu.dot_dimension_numbers<[1], [0], [0], [1], [0, 0, 1, 1], [], []>} : vector<2x8xf32>, vector<8x192xf32>, vector<2x192xf32> -> vector<2x192xf32>
    %33 = vector.broadcast %3 : vector<1x192xf32> to vector<2x192xf32>
    %34 = arith.addf %32, %33 : vector<2x192xf32>
    %35 = vector.extract_strided_slice %0 {offsets = [0, 20], sizes = [2, 4], strides = [1, 1]} : vector<2x40xf32> to vector<2x4xf32>
    %36 = vector.extract_strided_slice %0 {offsets = [0, 16], sizes = [2, 4], strides = [1, 1]} : vector<2x40xf32> to vector<2x4xf32>
    %37 = tpu.concatenate %35, %36 in 1 : vector<2x4xf32>, vector<2x4xf32> -> vector<2x8xf32>
    %cst_13 = arith.constant dense<0.000000e+00> : vector<2x192xf32>
    %38 = tpu.matmul %37, %1, %cst_13 {dimension_numbers = #tpu.dot_dimension_numbers<[1], [0], [0], [1], [0, 0, 1, 1], [], []>} : vector<2x8xf32>, vector<8x192xf32>, vector<2x192xf32> -> vector<2x192xf32>
    %39 = vector.broadcast %3 : vector<1x192xf32> to vector<2x192xf32>
    %40 = arith.addf %38, %39 : vector<2x192xf32>
    %41 = vector.extract_strided_slice %0 {offsets = [0, 24], sizes = [2, 4], strides = [1, 1]} : vector<2x40xf32> to vector<2x4xf32>
    %42 = vector.extract_strided_slice %0 {offsets = [0, 12], sizes = [2, 4], strides = [1, 1]} : vector<2x40xf32> to vector<2x4xf32>
    %43 = tpu.concatenate %41, %42 in 1 : vector<2x4xf32>, vector<2x4xf32> -> vector<2x8xf32>
    %cst_14 = arith.constant dense<0.000000e+00> : vector<2x192xf32>
    %44 = tpu.matmul %43, %1, %cst_14 {dimension_numbers = #tpu.dot_dimension_numbers<[1], [0], [0], [1], [0, 0, 1, 1], [], []>} : vector<2x8xf32>, vector<8x192xf32>, vector<2x192xf32> -> vector<2x192xf32>
    %45 = vector.broadcast %3 : vector<1x192xf32> to vector<2x192xf32>
    %46 = arith.addf %44, %45 : vector<2x192xf32>
    %47 = vector.extract_strided_slice %0 {offsets = [0, 28], sizes = [2, 4], strides = [1, 1]} : vector<2x40xf32> to vector<2x4xf32>
    %48 = vector.extract_strided_slice %0 {offsets = [0, 8], sizes = [2, 4], strides = [1, 1]} : vector<2x40xf32> to vector<2x4xf32>
    %49 = tpu.concatenate %47, %48 in 1 : vector<2x4xf32>, vector<2x4xf32> -> vector<2x8xf32>
    %cst_15 = arith.constant dense<0.000000e+00> : vector<2x192xf32>
    %50 = tpu.matmul %49, %1, %cst_15 {dimension_numbers = #tpu.dot_dimension_numbers<[1], [0], [0], [1], [0, 0, 1, 1], [], []>} : vector<2x8xf32>, vector<8x192xf32>, vector<2x192xf32> -> vector<2x192xf32>
    %51 = vector.broadcast %3 : vector<1x192xf32> to vector<2x192xf32>
    %52 = arith.addf %50, %51 : vector<2x192xf32>
    %53 = vector.extract_strided_slice %0 {offsets = [0, 32], sizes = [2, 4], strides = [1, 1]} : vector<2x40xf32> to vector<2x4xf32>
    %54 = vector.extract_strided_slice %0 {offsets = [0, 4], sizes = [2, 4], strides = [1, 1]} : vector<2x40xf32> to vector<2x4xf32>
    %55 = tpu.concatenate %53, %54 in 1 : vector<2x4xf32>, vector<2x4xf32> -> vector<2x8xf32>
    %cst_16 = arith.constant dense<0.000000e+00> : vector<2x192xf32>
    %56 = tpu.matmul %55, %1, %cst_16 {dimension_numbers = #tpu.dot_dimension_numbers<[1], [0], [0], [1], [0, 0, 1, 1], [], []>} : vector<2x8xf32>, vector<8x192xf32>, vector<2x192xf32> -> vector<2x192xf32>
    %57 = vector.broadcast %3 : vector<1x192xf32> to vector<2x192xf32>
    %58 = arith.addf %56, %57 : vector<2x192xf32>
    %59 = vector.extract_strided_slice %0 {offsets = [0, 36], sizes = [2, 4], strides = [1, 1]} : vector<2x40xf32> to vector<2x4xf32>
    %60 = vector.extract_strided_slice %0 {offsets = [0, 0], sizes = [2, 4], strides = [1, 1]} : vector<2x40xf32> to vector<2x4xf32>
    %61 = tpu.concatenate %59, %60 in 1 : vector<2x4xf32>, vector<2x4xf32> -> vector<2x8xf32>
    %cst_17 = arith.constant dense<0.000000e+00> : vector<2x192xf32>
    %62 = tpu.matmul %61, %1, %cst_17 {dimension_numbers = #tpu.dot_dimension_numbers<[1], [0], [0], [1], [0, 0, 1, 1], [], []>} : vector<2x8xf32>, vector<8x192xf32>, vector<2x192xf32> -> vector<2x192xf32>
    %63 = vector.broadcast %3 : vector<1x192xf32> to vector<2x192xf32>
    %64 = arith.addf %62, %63 : vector<2x192xf32>
    %cst_18 = arith.constant 0.000000e+00 : f32
    %65 = vector.broadcast %cst_18 : f32 to vector<2x64xf32>
    %cst_19 = arith.constant dense<0.000000e+00> : vector<2x192xf32>
    %66 = tpu.matmul %65, %2, %cst_19 {dimension_numbers = #tpu.dot_dimension_numbers<[1], [0], [0], [1], [0, 0, 1, 1], [], []>} : vector<2x64xf32>, vector<64x192xf32>, vector<2x192xf32> -> vector<2x192xf32>
    %67 = vector.extract_strided_slice %10 {offsets = [0, 0], sizes = [2, 128], strides = [1, 1]} : vector<2x192xf32> to vector<2x128xf32>
    %68 = vector.extract_strided_slice %66 {offsets = [0, 0], sizes = [2, 128], strides = [1, 1]} : vector<2x192xf32> to vector<2x128xf32>
    %69 = arith.addf %67, %68 : vector<2x128xf32>
    %70 = arith.negf %69 : vector<2x128xf32>
    %71 = math.exp %70 : vector<2x128xf32>
    %cst_20 = arith.constant 1.000000e+00 : f32
    %72 = vector.broadcast %cst_20 : f32 to vector<2x128xf32>
    %73 = arith.addf %72, %71 : vector<2x128xf32>
    %74 = arith.divf %72, %73 : vector<2x128xf32>
    %75 = vector.extract_strided_slice %74 {offsets = [0, 0], sizes = [2, 64], strides = [1, 1]} : vector<2x128xf32> to vector<2x64xf32>
    %76 = vector.extract_strided_slice %74 {offsets = [0, 64], sizes = [2, 64], strides = [1, 1]} : vector<2x128xf32> to vector<2x64xf32>
    %77 = vector.extract_strided_slice %10 {offsets = [0, 128], sizes = [2, 64], strides = [1, 1]} : vector<2x192xf32> to vector<2x64xf32>
    %78 = vector.extract_strided_slice %66 {offsets = [0, 128], sizes = [2, 64], strides = [1, 1]} : vector<2x192xf32> to vector<2x64xf32>
    %79 = vector.broadcast %4 : vector<1x64xf32> to vector<2x64xf32>
    %80 = arith.addf %78, %79 : vector<2x64xf32>
    %81 = arith.mulf %75, %80 : vector<2x64xf32>
    %82 = arith.addf %77, %81 : vector<2x64xf32>
    %83 = math.tanh %82 : vector<2x64xf32>
    %84 = arith.subf %65, %83 : vector<2x64xf32>
    %85 = arith.mulf %76, %84 : vector<2x64xf32>
    %86 = arith.addf %83, %85 : vector<2x64xf32>
    %cst_21 = arith.constant dense<0.000000e+00> : vector<2x192xf32>
    %87 = tpu.matmul %86, %2, %cst_21 {dimension_numbers = #tpu.dot_dimension_numbers<[1], [0], [0], [1], [0, 0, 1, 1], [], []>} : vector<2x64xf32>, vector<64x192xf32>, vector<2x192xf32> -> vector<2x192xf32>
    %88 = vector.extract_strided_slice %16 {offsets = [0, 0], sizes = [2, 128], strides = [1, 1]} : vector<2x192xf32> to vector<2x128xf32>
    %89 = vector.extract_strided_slice %87 {offsets = [0, 0], sizes = [2, 128], strides = [1, 1]} : vector<2x192xf32> to vector<2x128xf32>
    %90 = arith.addf %88, %89 : vector<2x128xf32>
    %91 = arith.negf %90 : vector<2x128xf32>
    %92 = math.exp %91 : vector<2x128xf32>
    %cst_22 = arith.constant 1.000000e+00 : f32
    %93 = vector.broadcast %cst_22 : f32 to vector<2x128xf32>
    %94 = arith.addf %93, %92 : vector<2x128xf32>
    %95 = arith.divf %93, %94 : vector<2x128xf32>
    %96 = vector.extract_strided_slice %95 {offsets = [0, 0], sizes = [2, 64], strides = [1, 1]} : vector<2x128xf32> to vector<2x64xf32>
    %97 = vector.extract_strided_slice %95 {offsets = [0, 64], sizes = [2, 64], strides = [1, 1]} : vector<2x128xf32> to vector<2x64xf32>
    %98 = vector.extract_strided_slice %16 {offsets = [0, 128], sizes = [2, 64], strides = [1, 1]} : vector<2x192xf32> to vector<2x64xf32>
    %99 = vector.extract_strided_slice %87 {offsets = [0, 128], sizes = [2, 64], strides = [1, 1]} : vector<2x192xf32> to vector<2x64xf32>
    %100 = vector.broadcast %4 : vector<1x64xf32> to vector<2x64xf32>
    %101 = arith.addf %99, %100 : vector<2x64xf32>
    %102 = arith.mulf %96, %101 : vector<2x64xf32>
    %103 = arith.addf %98, %102 : vector<2x64xf32>
    %104 = math.tanh %103 : vector<2x64xf32>
    %105 = arith.subf %86, %104 : vector<2x64xf32>
    %106 = arith.mulf %97, %105 : vector<2x64xf32>
    %107 = arith.addf %104, %106 : vector<2x64xf32>
    %cst_23 = arith.constant dense<0.000000e+00> : vector<2x192xf32>
    %108 = tpu.matmul %107, %2, %cst_23 {dimension_numbers = #tpu.dot_dimension_numbers<[1], [0], [0], [1], [0, 0, 1, 1], [], []>} : vector<2x64xf32>, vector<64x192xf32>, vector<2x192xf32> -> vector<2x192xf32>
    %109 = vector.extract_strided_slice %22 {offsets = [0, 0], sizes = [2, 128], strides = [1, 1]} : vector<2x192xf32> to vector<2x128xf32>
    %110 = vector.extract_strided_slice %108 {offsets = [0, 0], sizes = [2, 128], strides = [1, 1]} : vector<2x192xf32> to vector<2x128xf32>
    %111 = arith.addf %109, %110 : vector<2x128xf32>
    %112 = arith.negf %111 : vector<2x128xf32>
    %113 = math.exp %112 : vector<2x128xf32>
    %cst_24 = arith.constant 1.000000e+00 : f32
    %114 = vector.broadcast %cst_24 : f32 to vector<2x128xf32>
    %115 = arith.addf %114, %113 : vector<2x128xf32>
    %116 = arith.divf %114, %115 : vector<2x128xf32>
    %117 = vector.extract_strided_slice %116 {offsets = [0, 0], sizes = [2, 64], strides = [1, 1]} : vector<2x128xf32> to vector<2x64xf32>
    %118 = vector.extract_strided_slice %116 {offsets = [0, 64], sizes = [2, 64], strides = [1, 1]} : vector<2x128xf32> to vector<2x64xf32>
    %119 = vector.extract_strided_slice %22 {offsets = [0, 128], sizes = [2, 64], strides = [1, 1]} : vector<2x192xf32> to vector<2x64xf32>
    %120 = vector.extract_strided_slice %108 {offsets = [0, 128], sizes = [2, 64], strides = [1, 1]} : vector<2x192xf32> to vector<2x64xf32>
    %121 = vector.broadcast %4 : vector<1x64xf32> to vector<2x64xf32>
    %122 = arith.addf %120, %121 : vector<2x64xf32>
    %123 = arith.mulf %117, %122 : vector<2x64xf32>
    %124 = arith.addf %119, %123 : vector<2x64xf32>
    %125 = math.tanh %124 : vector<2x64xf32>
    %126 = arith.subf %107, %125 : vector<2x64xf32>
    %127 = arith.mulf %118, %126 : vector<2x64xf32>
    %128 = arith.addf %125, %127 : vector<2x64xf32>
    %cst_25 = arith.constant dense<0.000000e+00> : vector<2x192xf32>
    %129 = tpu.matmul %128, %2, %cst_25 {dimension_numbers = #tpu.dot_dimension_numbers<[1], [0], [0], [1], [0, 0, 1, 1], [], []>} : vector<2x64xf32>, vector<64x192xf32>, vector<2x192xf32> -> vector<2x192xf32>
    %130 = vector.extract_strided_slice %28 {offsets = [0, 0], sizes = [2, 128], strides = [1, 1]} : vector<2x192xf32> to vector<2x128xf32>
    %131 = vector.extract_strided_slice %129 {offsets = [0, 0], sizes = [2, 128], strides = [1, 1]} : vector<2x192xf32> to vector<2x128xf32>
    %132 = arith.addf %130, %131 : vector<2x128xf32>
    %133 = arith.negf %132 : vector<2x128xf32>
    %134 = math.exp %133 : vector<2x128xf32>
    %cst_26 = arith.constant 1.000000e+00 : f32
    %135 = vector.broadcast %cst_26 : f32 to vector<2x128xf32>
    %136 = arith.addf %135, %134 : vector<2x128xf32>
    %137 = arith.divf %135, %136 : vector<2x128xf32>
    %138 = vector.extract_strided_slice %137 {offsets = [0, 0], sizes = [2, 64], strides = [1, 1]} : vector<2x128xf32> to vector<2x64xf32>
    %139 = vector.extract_strided_slice %137 {offsets = [0, 64], sizes = [2, 64], strides = [1, 1]} : vector<2x128xf32> to vector<2x64xf32>
    %140 = vector.extract_strided_slice %28 {offsets = [0, 128], sizes = [2, 64], strides = [1, 1]} : vector<2x192xf32> to vector<2x64xf32>
    %141 = vector.extract_strided_slice %129 {offsets = [0, 128], sizes = [2, 64], strides = [1, 1]} : vector<2x192xf32> to vector<2x64xf32>
    %142 = vector.broadcast %4 : vector<1x64xf32> to vector<2x64xf32>
    %143 = arith.addf %141, %142 : vector<2x64xf32>
    %144 = arith.mulf %138, %143 : vector<2x64xf32>
    %145 = arith.addf %140, %144 : vector<2x64xf32>
    %146 = math.tanh %145 : vector<2x64xf32>
    %147 = arith.subf %128, %146 : vector<2x64xf32>
    %148 = arith.mulf %139, %147 : vector<2x64xf32>
    %149 = arith.addf %146, %148 : vector<2x64xf32>
    %cst_27 = arith.constant dense<0.000000e+00> : vector<2x192xf32>
    %150 = tpu.matmul %149, %2, %cst_27 {dimension_numbers = #tpu.dot_dimension_numbers<[1], [0], [0], [1], [0, 0, 1, 1], [], []>} : vector<2x64xf32>, vector<64x192xf32>, vector<2x192xf32> -> vector<2x192xf32>
    %151 = vector.extract_strided_slice %34 {offsets = [0, 0], sizes = [2, 128], strides = [1, 1]} : vector<2x192xf32> to vector<2x128xf32>
    %152 = vector.extract_strided_slice %150 {offsets = [0, 0], sizes = [2, 128], strides = [1, 1]} : vector<2x192xf32> to vector<2x128xf32>
    %153 = arith.addf %151, %152 : vector<2x128xf32>
    %154 = arith.negf %153 : vector<2x128xf32>
    %155 = math.exp %154 : vector<2x128xf32>
    %cst_28 = arith.constant 1.000000e+00 : f32
    %156 = vector.broadcast %cst_28 : f32 to vector<2x128xf32>
    %157 = arith.addf %156, %155 : vector<2x128xf32>
    %158 = arith.divf %156, %157 : vector<2x128xf32>
    %159 = vector.extract_strided_slice %158 {offsets = [0, 0], sizes = [2, 64], strides = [1, 1]} : vector<2x128xf32> to vector<2x64xf32>
    %160 = vector.extract_strided_slice %158 {offsets = [0, 64], sizes = [2, 64], strides = [1, 1]} : vector<2x128xf32> to vector<2x64xf32>
    %161 = vector.extract_strided_slice %34 {offsets = [0, 128], sizes = [2, 64], strides = [1, 1]} : vector<2x192xf32> to vector<2x64xf32>
    %162 = vector.extract_strided_slice %150 {offsets = [0, 128], sizes = [2, 64], strides = [1, 1]} : vector<2x192xf32> to vector<2x64xf32>
    %163 = vector.broadcast %4 : vector<1x64xf32> to vector<2x64xf32>
    %164 = arith.addf %162, %163 : vector<2x64xf32>
    %165 = arith.mulf %159, %164 : vector<2x64xf32>
    %166 = arith.addf %161, %165 : vector<2x64xf32>
    %167 = math.tanh %166 : vector<2x64xf32>
    %168 = arith.subf %149, %167 : vector<2x64xf32>
    %169 = arith.mulf %160, %168 : vector<2x64xf32>
    %170 = arith.addf %167, %169 : vector<2x64xf32>
    %cst_29 = arith.constant dense<0.000000e+00> : vector<2x192xf32>
    %171 = tpu.matmul %170, %2, %cst_29 {dimension_numbers = #tpu.dot_dimension_numbers<[1], [0], [0], [1], [0, 0, 1, 1], [], []>} : vector<2x64xf32>, vector<64x192xf32>, vector<2x192xf32> -> vector<2x192xf32>
    %172 = vector.extract_strided_slice %40 {offsets = [0, 0], sizes = [2, 128], strides = [1, 1]} : vector<2x192xf32> to vector<2x128xf32>
    %173 = vector.extract_strided_slice %171 {offsets = [0, 0], sizes = [2, 128], strides = [1, 1]} : vector<2x192xf32> to vector<2x128xf32>
    %174 = arith.addf %172, %173 : vector<2x128xf32>
    %175 = arith.negf %174 : vector<2x128xf32>
    %176 = math.exp %175 : vector<2x128xf32>
    %cst_30 = arith.constant 1.000000e+00 : f32
    %177 = vector.broadcast %cst_30 : f32 to vector<2x128xf32>
    %178 = arith.addf %177, %176 : vector<2x128xf32>
    %179 = arith.divf %177, %178 : vector<2x128xf32>
    %180 = vector.extract_strided_slice %179 {offsets = [0, 0], sizes = [2, 64], strides = [1, 1]} : vector<2x128xf32> to vector<2x64xf32>
    %181 = vector.extract_strided_slice %179 {offsets = [0, 64], sizes = [2, 64], strides = [1, 1]} : vector<2x128xf32> to vector<2x64xf32>
    %182 = vector.extract_strided_slice %40 {offsets = [0, 128], sizes = [2, 64], strides = [1, 1]} : vector<2x192xf32> to vector<2x64xf32>
    %183 = vector.extract_strided_slice %171 {offsets = [0, 128], sizes = [2, 64], strides = [1, 1]} : vector<2x192xf32> to vector<2x64xf32>
    %184 = vector.broadcast %4 : vector<1x64xf32> to vector<2x64xf32>
    %185 = arith.addf %183, %184 : vector<2x64xf32>
    %186 = arith.mulf %180, %185 : vector<2x64xf32>
    %187 = arith.addf %182, %186 : vector<2x64xf32>
    %188 = math.tanh %187 : vector<2x64xf32>
    %189 = arith.subf %170, %188 : vector<2x64xf32>
    %190 = arith.mulf %181, %189 : vector<2x64xf32>
    %191 = arith.addf %188, %190 : vector<2x64xf32>
    %cst_31 = arith.constant dense<0.000000e+00> : vector<2x192xf32>
    %192 = tpu.matmul %191, %2, %cst_31 {dimension_numbers = #tpu.dot_dimension_numbers<[1], [0], [0], [1], [0, 0, 1, 1], [], []>} : vector<2x64xf32>, vector<64x192xf32>, vector<2x192xf32> -> vector<2x192xf32>
    %193 = vector.extract_strided_slice %46 {offsets = [0, 0], sizes = [2, 128], strides = [1, 1]} : vector<2x192xf32> to vector<2x128xf32>
    %194 = vector.extract_strided_slice %192 {offsets = [0, 0], sizes = [2, 128], strides = [1, 1]} : vector<2x192xf32> to vector<2x128xf32>
    %195 = arith.addf %193, %194 : vector<2x128xf32>
    %196 = arith.negf %195 : vector<2x128xf32>
    %197 = math.exp %196 : vector<2x128xf32>
    %cst_32 = arith.constant 1.000000e+00 : f32
    %198 = vector.broadcast %cst_32 : f32 to vector<2x128xf32>
    %199 = arith.addf %198, %197 : vector<2x128xf32>
    %200 = arith.divf %198, %199 : vector<2x128xf32>
    %201 = vector.extract_strided_slice %200 {offsets = [0, 0], sizes = [2, 64], strides = [1, 1]} : vector<2x128xf32> to vector<2x64xf32>
    %202 = vector.extract_strided_slice %200 {offsets = [0, 64], sizes = [2, 64], strides = [1, 1]} : vector<2x128xf32> to vector<2x64xf32>
    %203 = vector.extract_strided_slice %46 {offsets = [0, 128], sizes = [2, 64], strides = [1, 1]} : vector<2x192xf32> to vector<2x64xf32>
    %204 = vector.extract_strided_slice %192 {offsets = [0, 128], sizes = [2, 64], strides = [1, 1]} : vector<2x192xf32> to vector<2x64xf32>
    %205 = vector.broadcast %4 : vector<1x64xf32> to vector<2x64xf32>
    %206 = arith.addf %204, %205 : vector<2x64xf32>
    %207 = arith.mulf %201, %206 : vector<2x64xf32>
    %208 = arith.addf %203, %207 : vector<2x64xf32>
    %209 = math.tanh %208 : vector<2x64xf32>
    %210 = arith.subf %191, %209 : vector<2x64xf32>
    %211 = arith.mulf %202, %210 : vector<2x64xf32>
    %212 = arith.addf %209, %211 : vector<2x64xf32>
    %cst_33 = arith.constant dense<0.000000e+00> : vector<2x192xf32>
    %213 = tpu.matmul %212, %2, %cst_33 {dimension_numbers = #tpu.dot_dimension_numbers<[1], [0], [0], [1], [0, 0, 1, 1], [], []>} : vector<2x64xf32>, vector<64x192xf32>, vector<2x192xf32> -> vector<2x192xf32>
    %214 = vector.extract_strided_slice %52 {offsets = [0, 0], sizes = [2, 128], strides = [1, 1]} : vector<2x192xf32> to vector<2x128xf32>
    %215 = vector.extract_strided_slice %213 {offsets = [0, 0], sizes = [2, 128], strides = [1, 1]} : vector<2x192xf32> to vector<2x128xf32>
    %216 = arith.addf %214, %215 : vector<2x128xf32>
    %217 = arith.negf %216 : vector<2x128xf32>
    %218 = math.exp %217 : vector<2x128xf32>
    %cst_34 = arith.constant 1.000000e+00 : f32
    %219 = vector.broadcast %cst_34 : f32 to vector<2x128xf32>
    %220 = arith.addf %219, %218 : vector<2x128xf32>
    %221 = arith.divf %219, %220 : vector<2x128xf32>
    %222 = vector.extract_strided_slice %221 {offsets = [0, 0], sizes = [2, 64], strides = [1, 1]} : vector<2x128xf32> to vector<2x64xf32>
    %223 = vector.extract_strided_slice %221 {offsets = [0, 64], sizes = [2, 64], strides = [1, 1]} : vector<2x128xf32> to vector<2x64xf32>
    %224 = vector.extract_strided_slice %52 {offsets = [0, 128], sizes = [2, 64], strides = [1, 1]} : vector<2x192xf32> to vector<2x64xf32>
    %225 = vector.extract_strided_slice %213 {offsets = [0, 128], sizes = [2, 64], strides = [1, 1]} : vector<2x192xf32> to vector<2x64xf32>
    %226 = vector.broadcast %4 : vector<1x64xf32> to vector<2x64xf32>
    %227 = arith.addf %225, %226 : vector<2x64xf32>
    %228 = arith.mulf %222, %227 : vector<2x64xf32>
    %229 = arith.addf %224, %228 : vector<2x64xf32>
    %230 = math.tanh %229 : vector<2x64xf32>
    %231 = arith.subf %212, %230 : vector<2x64xf32>
    %232 = arith.mulf %223, %231 : vector<2x64xf32>
    %233 = arith.addf %230, %232 : vector<2x64xf32>
    %cst_35 = arith.constant dense<0.000000e+00> : vector<2x192xf32>
    %234 = tpu.matmul %233, %2, %cst_35 {dimension_numbers = #tpu.dot_dimension_numbers<[1], [0], [0], [1], [0, 0, 1, 1], [], []>} : vector<2x64xf32>, vector<64x192xf32>, vector<2x192xf32> -> vector<2x192xf32>
    %235 = vector.extract_strided_slice %58 {offsets = [0, 0], sizes = [2, 128], strides = [1, 1]} : vector<2x192xf32> to vector<2x128xf32>
    %236 = vector.extract_strided_slice %234 {offsets = [0, 0], sizes = [2, 128], strides = [1, 1]} : vector<2x192xf32> to vector<2x128xf32>
    %237 = arith.addf %235, %236 : vector<2x128xf32>
    %238 = arith.negf %237 : vector<2x128xf32>
    %239 = math.exp %238 : vector<2x128xf32>
    %cst_36 = arith.constant 1.000000e+00 : f32
    %240 = vector.broadcast %cst_36 : f32 to vector<2x128xf32>
    %241 = arith.addf %240, %239 : vector<2x128xf32>
    %242 = arith.divf %240, %241 : vector<2x128xf32>
    %243 = vector.extract_strided_slice %242 {offsets = [0, 0], sizes = [2, 64], strides = [1, 1]} : vector<2x128xf32> to vector<2x64xf32>
    %244 = vector.extract_strided_slice %242 {offsets = [0, 64], sizes = [2, 64], strides = [1, 1]} : vector<2x128xf32> to vector<2x64xf32>
    %245 = vector.extract_strided_slice %58 {offsets = [0, 128], sizes = [2, 64], strides = [1, 1]} : vector<2x192xf32> to vector<2x64xf32>
    %246 = vector.extract_strided_slice %234 {offsets = [0, 128], sizes = [2, 64], strides = [1, 1]} : vector<2x192xf32> to vector<2x64xf32>
    %247 = vector.broadcast %4 : vector<1x64xf32> to vector<2x64xf32>
    %248 = arith.addf %246, %247 : vector<2x64xf32>
    %249 = arith.mulf %243, %248 : vector<2x64xf32>
    %250 = arith.addf %245, %249 : vector<2x64xf32>
    %251 = math.tanh %250 : vector<2x64xf32>
    %252 = arith.subf %233, %251 : vector<2x64xf32>
    %253 = arith.mulf %244, %252 : vector<2x64xf32>
    %254 = arith.addf %251, %253 : vector<2x64xf32>
    %cst_37 = arith.constant dense<0.000000e+00> : vector<2x192xf32>
    %255 = tpu.matmul %254, %2, %cst_37 {dimension_numbers = #tpu.dot_dimension_numbers<[1], [0], [0], [1], [0, 0, 1, 1], [], []>} : vector<2x64xf32>, vector<64x192xf32>, vector<2x192xf32> -> vector<2x192xf32>
    %256 = vector.extract_strided_slice %64 {offsets = [0, 0], sizes = [2, 128], strides = [1, 1]} : vector<2x192xf32> to vector<2x128xf32>
    %257 = vector.extract_strided_slice %255 {offsets = [0, 0], sizes = [2, 128], strides = [1, 1]} : vector<2x192xf32> to vector<2x128xf32>
    %258 = arith.addf %256, %257 : vector<2x128xf32>
    %259 = arith.negf %258 : vector<2x128xf32>
    %260 = math.exp %259 : vector<2x128xf32>
    %cst_38 = arith.constant 1.000000e+00 : f32
    %261 = vector.broadcast %cst_38 : f32 to vector<2x128xf32>
    %262 = arith.addf %261, %260 : vector<2x128xf32>
    %263 = arith.divf %261, %262 : vector<2x128xf32>
    %264 = vector.extract_strided_slice %263 {offsets = [0, 0], sizes = [2, 64], strides = [1, 1]} : vector<2x128xf32> to vector<2x64xf32>
    %265 = vector.extract_strided_slice %263 {offsets = [0, 64], sizes = [2, 64], strides = [1, 1]} : vector<2x128xf32> to vector<2x64xf32>
    %266 = vector.extract_strided_slice %64 {offsets = [0, 128], sizes = [2, 64], strides = [1, 1]} : vector<2x192xf32> to vector<2x64xf32>
    %267 = vector.extract_strided_slice %255 {offsets = [0, 128], sizes = [2, 64], strides = [1, 1]} : vector<2x192xf32> to vector<2x64xf32>
    %268 = vector.broadcast %4 : vector<1x64xf32> to vector<2x64xf32>
    %269 = arith.addf %267, %268 : vector<2x64xf32>
    %270 = arith.mulf %264, %269 : vector<2x64xf32>
    %271 = arith.addf %266, %270 : vector<2x64xf32>
    %272 = math.tanh %271 : vector<2x64xf32>
    %273 = arith.subf %254, %272 : vector<2x64xf32>
    %274 = arith.mulf %265, %273 : vector<2x64xf32>
    %275 = arith.addf %272, %274 : vector<2x64xf32>
    %c0_39 = arith.constant 0 : index
    %c0_40 = arith.constant 0 : index
    %276 = vector.load %arg5[%c0_39, %c0_40] : memref<128x192xf32, #tpu.memory_space<vmem>>, vector<128x192xf32>
    %c0_41 = arith.constant 0 : index
    %c0_42 = arith.constant 0 : index
    %277 = vector.load %arg6[%c0_41, %c0_42] : memref<64x192xf32, #tpu.memory_space<vmem>>, vector<64x192xf32>
    %c0_43 = arith.constant 0 : index
    %c0_44 = arith.constant 0 : index
    %278 = vector.load %arg7[%c0_43, %c0_44] : memref<1x192xf32, #tpu.memory_space<vmem>>, vector<1x192xf32>
    %c0_45 = arith.constant 0 : index
    %c0_46 = arith.constant 0 : index
    %279 = vector.load %arg8[%c0_45, %c0_46] : memref<1x64xf32, #tpu.memory_space<vmem>>, vector<1x64xf32>
    %280 = vector.extract_strided_slice %86 {offsets = [0, 0], sizes = [2, 32], strides = [1, 1]} : vector<2x64xf32> to vector<2x32xf32>
    %281 = vector.extract_strided_slice %275 {offsets = [0, 32], sizes = [2, 32], strides = [1, 1]} : vector<2x64xf32> to vector<2x32xf32>
    %282 = vector.extract_strided_slice %275 {offsets = [0, 0], sizes = [2, 32], strides = [1, 1]} : vector<2x64xf32> to vector<2x32xf32>
    %283 = vector.extract_strided_slice %86 {offsets = [0, 32], sizes = [2, 32], strides = [1, 1]} : vector<2x64xf32> to vector<2x32xf32>
    %284 = tpu.concatenate %280, %281, %282, %283 in 1 : vector<2x32xf32>, vector<2x32xf32>, vector<2x32xf32>, vector<2x32xf32> -> vector<2x128xf32>
    %cst_47 = arith.constant dense<0.000000e+00> : vector<2x192xf32>
    %285 = tpu.matmul %284, %276, %cst_47 {dimension_numbers = #tpu.dot_dimension_numbers<[1], [0], [0], [1], [0, 0, 1, 1], [], []>} : vector<2x128xf32>, vector<128x192xf32>, vector<2x192xf32> -> vector<2x192xf32>
    %286 = vector.broadcast %278 : vector<1x192xf32> to vector<2x192xf32>
    %287 = arith.addf %285, %286 : vector<2x192xf32>
    %288 = vector.extract_strided_slice %107 {offsets = [0, 0], sizes = [2, 32], strides = [1, 1]} : vector<2x64xf32> to vector<2x32xf32>
    %289 = vector.extract_strided_slice %254 {offsets = [0, 32], sizes = [2, 32], strides = [1, 1]} : vector<2x64xf32> to vector<2x32xf32>
    %290 = vector.extract_strided_slice %254 {offsets = [0, 0], sizes = [2, 32], strides = [1, 1]} : vector<2x64xf32> to vector<2x32xf32>
    %291 = vector.extract_strided_slice %107 {offsets = [0, 32], sizes = [2, 32], strides = [1, 1]} : vector<2x64xf32> to vector<2x32xf32>
    %292 = tpu.concatenate %288, %289, %290, %291 in 1 : vector<2x32xf32>, vector<2x32xf32>, vector<2x32xf32>, vector<2x32xf32> -> vector<2x128xf32>
    %cst_48 = arith.constant dense<0.000000e+00> : vector<2x192xf32>
    %293 = tpu.matmul %292, %276, %cst_48 {dimension_numbers = #tpu.dot_dimension_numbers<[1], [0], [0], [1], [0, 0, 1, 1], [], []>} : vector<2x128xf32>, vector<128x192xf32>, vector<2x192xf32> -> vector<2x192xf32>
    %294 = vector.broadcast %278 : vector<1x192xf32> to vector<2x192xf32>
    %295 = arith.addf %293, %294 : vector<2x192xf32>
    %296 = vector.extract_strided_slice %128 {offsets = [0, 0], sizes = [2, 32], strides = [1, 1]} : vector<2x64xf32> to vector<2x32xf32>
    %297 = vector.extract_strided_slice %233 {offsets = [0, 32], sizes = [2, 32], strides = [1, 1]} : vector<2x64xf32> to vector<2x32xf32>
    %298 = vector.extract_strided_slice %233 {offsets = [0, 0], sizes = [2, 32], strides = [1, 1]} : vector<2x64xf32> to vector<2x32xf32>
    %299 = vector.extract_strided_slice %128 {offsets = [0, 32], sizes = [2, 32], strides = [1, 1]} : vector<2x64xf32> to vector<2x32xf32>
    %300 = tpu.concatenate %296, %297, %298, %299 in 1 : vector<2x32xf32>, vector<2x32xf32>, vector<2x32xf32>, vector<2x32xf32> -> vector<2x128xf32>
    %cst_49 = arith.constant dense<0.000000e+00> : vector<2x192xf32>
    %301 = tpu.matmul %300, %276, %cst_49 {dimension_numbers = #tpu.dot_dimension_numbers<[1], [0], [0], [1], [0, 0, 1, 1], [], []>} : vector<2x128xf32>, vector<128x192xf32>, vector<2x192xf32> -> vector<2x192xf32>
    %302 = vector.broadcast %278 : vector<1x192xf32> to vector<2x192xf32>
    %303 = arith.addf %301, %302 : vector<2x192xf32>
    %304 = vector.extract_strided_slice %149 {offsets = [0, 0], sizes = [2, 32], strides = [1, 1]} : vector<2x64xf32> to vector<2x32xf32>
    %305 = vector.extract_strided_slice %212 {offsets = [0, 32], sizes = [2, 32], strides = [1, 1]} : vector<2x64xf32> to vector<2x32xf32>
    %306 = vector.extract_strided_slice %212 {offsets = [0, 0], sizes = [2, 32], strides = [1, 1]} : vector<2x64xf32> to vector<2x32xf32>
    %307 = vector.extract_strided_slice %149 {offsets = [0, 32], sizes = [2, 32], strides = [1, 1]} : vector<2x64xf32> to vector<2x32xf32>
    %308 = tpu.concatenate %304, %305, %306, %307 in 1 : vector<2x32xf32>, vector<2x32xf32>, vector<2x32xf32>, vector<2x32xf32> -> vector<2x128xf32>
    %cst_50 = arith.constant dense<0.000000e+00> : vector<2x192xf32>
    %309 = tpu.matmul %308, %276, %cst_50 {dimension_numbers = #tpu.dot_dimension_numbers<[1], [0], [0], [1], [0, 0, 1, 1], [], []>} : vector<2x128xf32>, vector<128x192xf32>, vector<2x192xf32> -> vector<2x192xf32>
    %310 = vector.broadcast %278 : vector<1x192xf32> to vector<2x192xf32>
    %311 = arith.addf %309, %310 : vector<2x192xf32>
    %312 = vector.extract_strided_slice %170 {offsets = [0, 0], sizes = [2, 32], strides = [1, 1]} : vector<2x64xf32> to vector<2x32xf32>
    %313 = vector.extract_strided_slice %191 {offsets = [0, 32], sizes = [2, 32], strides = [1, 1]} : vector<2x64xf32> to vector<2x32xf32>
    %314 = vector.extract_strided_slice %191 {offsets = [0, 0], sizes = [2, 32], strides = [1, 1]} : vector<2x64xf32> to vector<2x32xf32>
    %315 = vector.extract_strided_slice %170 {offsets = [0, 32], sizes = [2, 32], strides = [1, 1]} : vector<2x64xf32> to vector<2x32xf32>
    %316 = tpu.concatenate %312, %313, %314, %315 in 1 : vector<2x32xf32>, vector<2x32xf32>, vector<2x32xf32>, vector<2x32xf32> -> vector<2x128xf32>
    %cst_51 = arith.constant dense<0.000000e+00> : vector<2x192xf32>
    %317 = tpu.matmul %316, %276, %cst_51 {dimension_numbers = #tpu.dot_dimension_numbers<[1], [0], [0], [1], [0, 0, 1, 1], [], []>} : vector<2x128xf32>, vector<128x192xf32>, vector<2x192xf32> -> vector<2x192xf32>
    %318 = vector.broadcast %278 : vector<1x192xf32> to vector<2x192xf32>
    %319 = arith.addf %317, %318 : vector<2x192xf32>
    %320 = vector.extract_strided_slice %191 {offsets = [0, 0], sizes = [2, 32], strides = [1, 1]} : vector<2x64xf32> to vector<2x32xf32>
    %321 = vector.extract_strided_slice %170 {offsets = [0, 32], sizes = [2, 32], strides = [1, 1]} : vector<2x64xf32> to vector<2x32xf32>
    %322 = vector.extract_strided_slice %170 {offsets = [0, 0], sizes = [2, 32], strides = [1, 1]} : vector<2x64xf32> to vector<2x32xf32>
    %323 = vector.extract_strided_slice %191 {offsets = [0, 32], sizes = [2, 32], strides = [1, 1]} : vector<2x64xf32> to vector<2x32xf32>
    %324 = tpu.concatenate %320, %321, %322, %323 in 1 : vector<2x32xf32>, vector<2x32xf32>, vector<2x32xf32>, vector<2x32xf32> -> vector<2x128xf32>
    %cst_52 = arith.constant dense<0.000000e+00> : vector<2x192xf32>
    %325 = tpu.matmul %324, %276, %cst_52 {dimension_numbers = #tpu.dot_dimension_numbers<[1], [0], [0], [1], [0, 0, 1, 1], [], []>} : vector<2x128xf32>, vector<128x192xf32>, vector<2x192xf32> -> vector<2x192xf32>
    %326 = vector.broadcast %278 : vector<1x192xf32> to vector<2x192xf32>
    %327 = arith.addf %325, %326 : vector<2x192xf32>
    %328 = vector.extract_strided_slice %212 {offsets = [0, 0], sizes = [2, 32], strides = [1, 1]} : vector<2x64xf32> to vector<2x32xf32>
    %329 = vector.extract_strided_slice %149 {offsets = [0, 32], sizes = [2, 32], strides = [1, 1]} : vector<2x64xf32> to vector<2x32xf32>
    %330 = vector.extract_strided_slice %149 {offsets = [0, 0], sizes = [2, 32], strides = [1, 1]} : vector<2x64xf32> to vector<2x32xf32>
    %331 = vector.extract_strided_slice %212 {offsets = [0, 32], sizes = [2, 32], strides = [1, 1]} : vector<2x64xf32> to vector<2x32xf32>
    %332 = tpu.concatenate %328, %329, %330, %331 in 1 : vector<2x32xf32>, vector<2x32xf32>, vector<2x32xf32>, vector<2x32xf32> -> vector<2x128xf32>
    %cst_53 = arith.constant dense<0.000000e+00> : vector<2x192xf32>
    %333 = tpu.matmul %332, %276, %cst_53 {dimension_numbers = #tpu.dot_dimension_numbers<[1], [0], [0], [1], [0, 0, 1, 1], [], []>} : vector<2x128xf32>, vector<128x192xf32>, vector<2x192xf32> -> vector<2x192xf32>
    %334 = vector.broadcast %278 : vector<1x192xf32> to vector<2x192xf32>
    %335 = arith.addf %333, %334 : vector<2x192xf32>
    %336 = vector.extract_strided_slice %233 {offsets = [0, 0], sizes = [2, 32], strides = [1, 1]} : vector<2x64xf32> to vector<2x32xf32>
    %337 = vector.extract_strided_slice %128 {offsets = [0, 32], sizes = [2, 32], strides = [1, 1]} : vector<2x64xf32> to vector<2x32xf32>
    %338 = vector.extract_strided_slice %128 {offsets = [0, 0], sizes = [2, 32], strides = [1, 1]} : vector<2x64xf32> to vector<2x32xf32>
    %339 = vector.extract_strided_slice %233 {offsets = [0, 32], sizes = [2, 32], strides = [1, 1]} : vector<2x64xf32> to vector<2x32xf32>
    %340 = tpu.concatenate %336, %337, %338, %339 in 1 : vector<2x32xf32>, vector<2x32xf32>, vector<2x32xf32>, vector<2x32xf32> -> vector<2x128xf32>
    %cst_54 = arith.constant dense<0.000000e+00> : vector<2x192xf32>
    %341 = tpu.matmul %340, %276, %cst_54 {dimension_numbers = #tpu.dot_dimension_numbers<[1], [0], [0], [1], [0, 0, 1, 1], [], []>} : vector<2x128xf32>, vector<128x192xf32>, vector<2x192xf32> -> vector<2x192xf32>
    %342 = vector.broadcast %278 : vector<1x192xf32> to vector<2x192xf32>
    %343 = arith.addf %341, %342 : vector<2x192xf32>
    %cst_55 = arith.constant 0.000000e+00 : f32
    %344 = vector.broadcast %cst_55 : f32 to vector<2x64xf32>
    %cst_56 = arith.constant dense<0.000000e+00> : vector<2x192xf32>
    %345 = tpu.matmul %344, %277, %cst_56 {dimension_numbers = #tpu.dot_dimension_numbers<[1], [0], [0], [1], [0, 0, 1, 1], [], []>} : vector<2x64xf32>, vector<64x192xf32>, vector<2x192xf32> -> vector<2x192xf32>
    %346 = vector.extract_strided_slice %287 {offsets = [0, 0], sizes = [2, 128], strides = [1, 1]} : vector<2x192xf32> to vector<2x128xf32>
    %347 = vector.extract_strided_slice %345 {offsets = [0, 0], sizes = [2, 128], strides = [1, 1]} : vector<2x192xf32> to vector<2x128xf32>
    %348 = arith.addf %346, %347 : vector<2x128xf32>
    %349 = arith.negf %348 : vector<2x128xf32>
    %350 = math.exp %349 : vector<2x128xf32>
    %cst_57 = arith.constant 1.000000e+00 : f32
    %351 = vector.broadcast %cst_57 : f32 to vector<2x128xf32>
    %352 = arith.addf %351, %350 : vector<2x128xf32>
    %353 = arith.divf %351, %352 : vector<2x128xf32>
    %354 = vector.extract_strided_slice %353 {offsets = [0, 0], sizes = [2, 64], strides = [1, 1]} : vector<2x128xf32> to vector<2x64xf32>
    %355 = vector.extract_strided_slice %353 {offsets = [0, 64], sizes = [2, 64], strides = [1, 1]} : vector<2x128xf32> to vector<2x64xf32>
    %356 = vector.extract_strided_slice %287 {offsets = [0, 128], sizes = [2, 64], strides = [1, 1]} : vector<2x192xf32> to vector<2x64xf32>
    %357 = vector.extract_strided_slice %345 {offsets = [0, 128], sizes = [2, 64], strides = [1, 1]} : vector<2x192xf32> to vector<2x64xf32>
    %358 = vector.broadcast %279 : vector<1x64xf32> to vector<2x64xf32>
    %359 = arith.addf %357, %358 : vector<2x64xf32>
    %360 = arith.mulf %354, %359 : vector<2x64xf32>
    %361 = arith.addf %356, %360 : vector<2x64xf32>
    %362 = math.tanh %361 : vector<2x64xf32>
    %363 = arith.subf %344, %362 : vector<2x64xf32>
    %364 = arith.mulf %355, %363 : vector<2x64xf32>
    %365 = arith.addf %362, %364 : vector<2x64xf32>
    %cst_58 = arith.constant dense<0.000000e+00> : vector<2x192xf32>
    %366 = tpu.matmul %365, %277, %cst_58 {dimension_numbers = #tpu.dot_dimension_numbers<[1], [0], [0], [1], [0, 0, 1, 1], [], []>} : vector<2x64xf32>, vector<64x192xf32>, vector<2x192xf32> -> vector<2x192xf32>
    %367 = vector.extract_strided_slice %295 {offsets = [0, 0], sizes = [2, 128], strides = [1, 1]} : vector<2x192xf32> to vector<2x128xf32>
    %368 = vector.extract_strided_slice %366 {offsets = [0, 0], sizes = [2, 128], strides = [1, 1]} : vector<2x192xf32> to vector<2x128xf32>
    %369 = arith.addf %367, %368 : vector<2x128xf32>
    %370 = arith.negf %369 : vector<2x128xf32>
    %371 = math.exp %370 : vector<2x128xf32>
    %cst_59 = arith.constant 1.000000e+00 : f32
    %372 = vector.broadcast %cst_59 : f32 to vector<2x128xf32>
    %373 = arith.addf %372, %371 : vector<2x128xf32>
    %374 = arith.divf %372, %373 : vector<2x128xf32>
    %375 = vector.extract_strided_slice %374 {offsets = [0, 0], sizes = [2, 64], strides = [1, 1]} : vector<2x128xf32> to vector<2x64xf32>
    %376 = vector.extract_strided_slice %374 {offsets = [0, 64], sizes = [2, 64], strides = [1, 1]} : vector<2x128xf32> to vector<2x64xf32>
    %377 = vector.extract_strided_slice %295 {offsets = [0, 128], sizes = [2, 64], strides = [1, 1]} : vector<2x192xf32> to vector<2x64xf32>
    %378 = vector.extract_strided_slice %366 {offsets = [0, 128], sizes = [2, 64], strides = [1, 1]} : vector<2x192xf32> to vector<2x64xf32>
    %379 = vector.broadcast %279 : vector<1x64xf32> to vector<2x64xf32>
    %380 = arith.addf %378, %379 : vector<2x64xf32>
    %381 = arith.mulf %375, %380 : vector<2x64xf32>
    %382 = arith.addf %377, %381 : vector<2x64xf32>
    %383 = math.tanh %382 : vector<2x64xf32>
    %384 = arith.subf %365, %383 : vector<2x64xf32>
    %385 = arith.mulf %376, %384 : vector<2x64xf32>
    %386 = arith.addf %383, %385 : vector<2x64xf32>
    %cst_60 = arith.constant dense<0.000000e+00> : vector<2x192xf32>
    %387 = tpu.matmul %386, %277, %cst_60 {dimension_numbers = #tpu.dot_dimension_numbers<[1], [0], [0], [1], [0, 0, 1, 1], [], []>} : vector<2x64xf32>, vector<64x192xf32>, vector<2x192xf32> -> vector<2x192xf32>
    %388 = vector.extract_strided_slice %303 {offsets = [0, 0], sizes = [2, 128], strides = [1, 1]} : vector<2x192xf32> to vector<2x128xf32>
    %389 = vector.extract_strided_slice %387 {offsets = [0, 0], sizes = [2, 128], strides = [1, 1]} : vector<2x192xf32> to vector<2x128xf32>
    %390 = arith.addf %388, %389 : vector<2x128xf32>
    %391 = arith.negf %390 : vector<2x128xf32>
    %392 = math.exp %391 : vector<2x128xf32>
    %cst_61 = arith.constant 1.000000e+00 : f32
    %393 = vector.broadcast %cst_61 : f32 to vector<2x128xf32>
    %394 = arith.addf %393, %392 : vector<2x128xf32>
    %395 = arith.divf %393, %394 : vector<2x128xf32>
    %396 = vector.extract_strided_slice %395 {offsets = [0, 0], sizes = [2, 64], strides = [1, 1]} : vector<2x128xf32> to vector<2x64xf32>
    %397 = vector.extract_strided_slice %395 {offsets = [0, 64], sizes = [2, 64], strides = [1, 1]} : vector<2x128xf32> to vector<2x64xf32>
    %398 = vector.extract_strided_slice %303 {offsets = [0, 128], sizes = [2, 64], strides = [1, 1]} : vector<2x192xf32> to vector<2x64xf32>
    %399 = vector.extract_strided_slice %387 {offsets = [0, 128], sizes = [2, 64], strides = [1, 1]} : vector<2x192xf32> to vector<2x64xf32>
    %400 = vector.broadcast %279 : vector<1x64xf32> to vector<2x64xf32>
    %401 = arith.addf %399, %400 : vector<2x64xf32>
    %402 = arith.mulf %396, %401 : vector<2x64xf32>
    %403 = arith.addf %398, %402 : vector<2x64xf32>
    %404 = math.tanh %403 : vector<2x64xf32>
    %405 = arith.subf %386, %404 : vector<2x64xf32>
    %406 = arith.mulf %397, %405 : vector<2x64xf32>
    %407 = arith.addf %404, %406 : vector<2x64xf32>
    %cst_62 = arith.constant dense<0.000000e+00> : vector<2x192xf32>
    %408 = tpu.matmul %407, %277, %cst_62 {dimension_numbers = #tpu.dot_dimension_numbers<[1], [0], [0], [1], [0, 0, 1, 1], [], []>} : vector<2x64xf32>, vector<64x192xf32>, vector<2x192xf32> -> vector<2x192xf32>
    %409 = vector.extract_strided_slice %311 {offsets = [0, 0], sizes = [2, 128], strides = [1, 1]} : vector<2x192xf32> to vector<2x128xf32>
    %410 = vector.extract_strided_slice %408 {offsets = [0, 0], sizes = [2, 128], strides = [1, 1]} : vector<2x192xf32> to vector<2x128xf32>
    %411 = arith.addf %409, %410 : vector<2x128xf32>
    %412 = arith.negf %411 : vector<2x128xf32>
    %413 = math.exp %412 : vector<2x128xf32>
    %cst_63 = arith.constant 1.000000e+00 : f32
    %414 = vector.broadcast %cst_63 : f32 to vector<2x128xf32>
    %415 = arith.addf %414, %413 : vector<2x128xf32>
    %416 = arith.divf %414, %415 : vector<2x128xf32>
    %417 = vector.extract_strided_slice %416 {offsets = [0, 0], sizes = [2, 64], strides = [1, 1]} : vector<2x128xf32> to vector<2x64xf32>
    %418 = vector.extract_strided_slice %416 {offsets = [0, 64], sizes = [2, 64], strides = [1, 1]} : vector<2x128xf32> to vector<2x64xf32>
    %419 = vector.extract_strided_slice %311 {offsets = [0, 128], sizes = [2, 64], strides = [1, 1]} : vector<2x192xf32> to vector<2x64xf32>
    %420 = vector.extract_strided_slice %408 {offsets = [0, 128], sizes = [2, 64], strides = [1, 1]} : vector<2x192xf32> to vector<2x64xf32>
    %421 = vector.broadcast %279 : vector<1x64xf32> to vector<2x64xf32>
    %422 = arith.addf %420, %421 : vector<2x64xf32>
    %423 = arith.mulf %417, %422 : vector<2x64xf32>
    %424 = arith.addf %419, %423 : vector<2x64xf32>
    %425 = math.tanh %424 : vector<2x64xf32>
    %426 = arith.subf %407, %425 : vector<2x64xf32>
    %427 = arith.mulf %418, %426 : vector<2x64xf32>
    %428 = arith.addf %425, %427 : vector<2x64xf32>
    %cst_64 = arith.constant dense<0.000000e+00> : vector<2x192xf32>
    %429 = tpu.matmul %428, %277, %cst_64 {dimension_numbers = #tpu.dot_dimension_numbers<[1], [0], [0], [1], [0, 0, 1, 1], [], []>} : vector<2x64xf32>, vector<64x192xf32>, vector<2x192xf32> -> vector<2x192xf32>
    %430 = vector.extract_strided_slice %319 {offsets = [0, 0], sizes = [2, 128], strides = [1, 1]} : vector<2x192xf32> to vector<2x128xf32>
    %431 = vector.extract_strided_slice %429 {offsets = [0, 0], sizes = [2, 128], strides = [1, 1]} : vector<2x192xf32> to vector<2x128xf32>
    %432 = arith.addf %430, %431 : vector<2x128xf32>
    %433 = arith.negf %432 : vector<2x128xf32>
    %434 = math.exp %433 : vector<2x128xf32>
    %cst_65 = arith.constant 1.000000e+00 : f32
    %435 = vector.broadcast %cst_65 : f32 to vector<2x128xf32>
    %436 = arith.addf %435, %434 : vector<2x128xf32>
    %437 = arith.divf %435, %436 : vector<2x128xf32>
    %438 = vector.extract_strided_slice %437 {offsets = [0, 0], sizes = [2, 64], strides = [1, 1]} : vector<2x128xf32> to vector<2x64xf32>
    %439 = vector.extract_strided_slice %437 {offsets = [0, 64], sizes = [2, 64], strides = [1, 1]} : vector<2x128xf32> to vector<2x64xf32>
    %440 = vector.extract_strided_slice %319 {offsets = [0, 128], sizes = [2, 64], strides = [1, 1]} : vector<2x192xf32> to vector<2x64xf32>
    %441 = vector.extract_strided_slice %429 {offsets = [0, 128], sizes = [2, 64], strides = [1, 1]} : vector<2x192xf32> to vector<2x64xf32>
    %442 = vector.broadcast %279 : vector<1x64xf32> to vector<2x64xf32>
    %443 = arith.addf %441, %442 : vector<2x64xf32>
    %444 = arith.mulf %438, %443 : vector<2x64xf32>
    %445 = arith.addf %440, %444 : vector<2x64xf32>
    %446 = math.tanh %445 : vector<2x64xf32>
    %447 = arith.subf %428, %446 : vector<2x64xf32>
    %448 = arith.mulf %439, %447 : vector<2x64xf32>
    %449 = arith.addf %446, %448 : vector<2x64xf32>
    %cst_66 = arith.constant dense<0.000000e+00> : vector<2x192xf32>
    %450 = tpu.matmul %449, %277, %cst_66 {dimension_numbers = #tpu.dot_dimension_numbers<[1], [0], [0], [1], [0, 0, 1, 1], [], []>} : vector<2x64xf32>, vector<64x192xf32>, vector<2x192xf32> -> vector<2x192xf32>
    %451 = vector.extract_strided_slice %327 {offsets = [0, 0], sizes = [2, 128], strides = [1, 1]} : vector<2x192xf32> to vector<2x128xf32>
    %452 = vector.extract_strided_slice %450 {offsets = [0, 0], sizes = [2, 128], strides = [1, 1]} : vector<2x192xf32> to vector<2x128xf32>
    %453 = arith.addf %451, %452 : vector<2x128xf32>
    %454 = arith.negf %453 : vector<2x128xf32>
    %455 = math.exp %454 : vector<2x128xf32>
    %cst_67 = arith.constant 1.000000e+00 : f32
    %456 = vector.broadcast %cst_67 : f32 to vector<2x128xf32>
    %457 = arith.addf %456, %455 : vector<2x128xf32>
    %458 = arith.divf %456, %457 : vector<2x128xf32>
    %459 = vector.extract_strided_slice %458 {offsets = [0, 0], sizes = [2, 64], strides = [1, 1]} : vector<2x128xf32> to vector<2x64xf32>
    %460 = vector.extract_strided_slice %458 {offsets = [0, 64], sizes = [2, 64], strides = [1, 1]} : vector<2x128xf32> to vector<2x64xf32>
    %461 = vector.extract_strided_slice %327 {offsets = [0, 128], sizes = [2, 64], strides = [1, 1]} : vector<2x192xf32> to vector<2x64xf32>
    %462 = vector.extract_strided_slice %450 {offsets = [0, 128], sizes = [2, 64], strides = [1, 1]} : vector<2x192xf32> to vector<2x64xf32>
    %463 = vector.broadcast %279 : vector<1x64xf32> to vector<2x64xf32>
    %464 = arith.addf %462, %463 : vector<2x64xf32>
    %465 = arith.mulf %459, %464 : vector<2x64xf32>
    %466 = arith.addf %461, %465 : vector<2x64xf32>
    %467 = math.tanh %466 : vector<2x64xf32>
    %468 = arith.subf %449, %467 : vector<2x64xf32>
    %469 = arith.mulf %460, %468 : vector<2x64xf32>
    %470 = arith.addf %467, %469 : vector<2x64xf32>
    %cst_68 = arith.constant dense<0.000000e+00> : vector<2x192xf32>
    %471 = tpu.matmul %470, %277, %cst_68 {dimension_numbers = #tpu.dot_dimension_numbers<[1], [0], [0], [1], [0, 0, 1, 1], [], []>} : vector<2x64xf32>, vector<64x192xf32>, vector<2x192xf32> -> vector<2x192xf32>
    %472 = vector.extract_strided_slice %335 {offsets = [0, 0], sizes = [2, 128], strides = [1, 1]} : vector<2x192xf32> to vector<2x128xf32>
    %473 = vector.extract_strided_slice %471 {offsets = [0, 0], sizes = [2, 128], strides = [1, 1]} : vector<2x192xf32> to vector<2x128xf32>
    %474 = arith.addf %472, %473 : vector<2x128xf32>
    %475 = arith.negf %474 : vector<2x128xf32>
    %476 = math.exp %475 : vector<2x128xf32>
    %cst_69 = arith.constant 1.000000e+00 : f32
    %477 = vector.broadcast %cst_69 : f32 to vector<2x128xf32>
    %478 = arith.addf %477, %476 : vector<2x128xf32>
    %479 = arith.divf %477, %478 : vector<2x128xf32>
    %480 = vector.extract_strided_slice %479 {offsets = [0, 0], sizes = [2, 64], strides = [1, 1]} : vector<2x128xf32> to vector<2x64xf32>
    %481 = vector.extract_strided_slice %479 {offsets = [0, 64], sizes = [2, 64], strides = [1, 1]} : vector<2x128xf32> to vector<2x64xf32>
    %482 = vector.extract_strided_slice %335 {offsets = [0, 128], sizes = [2, 64], strides = [1, 1]} : vector<2x192xf32> to vector<2x64xf32>
    %483 = vector.extract_strided_slice %471 {offsets = [0, 128], sizes = [2, 64], strides = [1, 1]} : vector<2x192xf32> to vector<2x64xf32>
    %484 = vector.broadcast %279 : vector<1x64xf32> to vector<2x64xf32>
    %485 = arith.addf %483, %484 : vector<2x64xf32>
    %486 = arith.mulf %480, %485 : vector<2x64xf32>
    %487 = arith.addf %482, %486 : vector<2x64xf32>
    %488 = math.tanh %487 : vector<2x64xf32>
    %489 = arith.subf %470, %488 : vector<2x64xf32>
    %490 = arith.mulf %481, %489 : vector<2x64xf32>
    %491 = arith.addf %488, %490 : vector<2x64xf32>
    %cst_70 = arith.constant dense<0.000000e+00> : vector<2x192xf32>
    %492 = tpu.matmul %491, %277, %cst_70 {dimension_numbers = #tpu.dot_dimension_numbers<[1], [0], [0], [1], [0, 0, 1, 1], [], []>} : vector<2x64xf32>, vector<64x192xf32>, vector<2x192xf32> -> vector<2x192xf32>
    %493 = vector.extract_strided_slice %343 {offsets = [0, 0], sizes = [2, 128], strides = [1, 1]} : vector<2x192xf32> to vector<2x128xf32>
    %494 = vector.extract_strided_slice %492 {offsets = [0, 0], sizes = [2, 128], strides = [1, 1]} : vector<2x192xf32> to vector<2x128xf32>
    %495 = arith.addf %493, %494 : vector<2x128xf32>
    %496 = arith.negf %495 : vector<2x128xf32>
    %497 = math.exp %496 : vector<2x128xf32>
    %cst_71 = arith.constant 1.000000e+00 : f32
    %498 = vector.broadcast %cst_71 : f32 to vector<2x128xf32>
    %499 = arith.addf %498, %497 : vector<2x128xf32>
    %500 = arith.divf %498, %499 : vector<2x128xf32>
    %501 = vector.extract_strided_slice %500 {offsets = [0, 0], sizes = [2, 64], strides = [1, 1]} : vector<2x128xf32> to vector<2x64xf32>
    %502 = vector.extract_strided_slice %500 {offsets = [0, 64], sizes = [2, 64], strides = [1, 1]} : vector<2x128xf32> to vector<2x64xf32>
    %503 = vector.extract_strided_slice %343 {offsets = [0, 128], sizes = [2, 64], strides = [1, 1]} : vector<2x192xf32> to vector<2x64xf32>
    %504 = vector.extract_strided_slice %492 {offsets = [0, 128], sizes = [2, 64], strides = [1, 1]} : vector<2x192xf32> to vector<2x64xf32>
    %505 = vector.broadcast %279 : vector<1x64xf32> to vector<2x64xf32>
    %506 = arith.addf %504, %505 : vector<2x64xf32>
    %507 = arith.mulf %501, %506 : vector<2x64xf32>
    %508 = arith.addf %503, %507 : vector<2x64xf32>
    %509 = math.tanh %508 : vector<2x64xf32>
    %510 = arith.subf %491, %509 : vector<2x64xf32>
    %511 = arith.mulf %502, %510 : vector<2x64xf32>
    %512 = arith.addf %509, %511 : vector<2x64xf32>
    %c0_72 = arith.constant 0 : index
    %c0_73 = arith.constant 0 : index
    %513 = vector.load %arg9[%c0_72, %c0_73] : memref<1x32xf32, #tpu.memory_space<vmem>>, vector<1x32xf32>
    %c0_74 = arith.constant 0 : index
    %c0_75 = arith.constant 0 : index
    %514 = vector.load %arg10[%c0_74, %c0_75] : memref<1x32xf32, #tpu.memory_space<vmem>>, vector<1x32xf32>
    %515 = vector.extract_strided_slice %407 {offsets = [0, 0], sizes = [2, 32], strides = [1, 1]} : vector<2x64xf32> to vector<2x32xf32>
    %516 = vector.extract_strided_slice %512 {offsets = [0, 32], sizes = [2, 32], strides = [1, 1]} : vector<2x64xf32> to vector<2x32xf32>
    %517 = vector.broadcast %513 : vector<1x32xf32> to vector<2x32xf32>
    %518 = arith.mulf %515, %517 : vector<2x32xf32>
    %519 = vector.broadcast %514 : vector<1x32xf32> to vector<2x32xf32>
    %520 = arith.mulf %516, %519 : vector<2x32xf32>
    %521 = arith.addf %518, %520 : vector<2x32xf32>
    %cst_76 = arith.constant dense<0.000000e+00> : vector<2xf32>
    %522 = vector.multi_reduction <add>, %521, %cst_76 [1] : vector<2x32xf32> to vector<2xf32>
    %523 = vector.shape_cast %522 : vector<2xf32> to vector<2x1xf32>
    %524 = vector.extract_strided_slice %428 {offsets = [0, 0], sizes = [2, 32], strides = [1, 1]} : vector<2x64xf32> to vector<2x32xf32>
    %525 = vector.extract_strided_slice %491 {offsets = [0, 32], sizes = [2, 32], strides = [1, 1]} : vector<2x64xf32> to vector<2x32xf32>
    %526 = vector.broadcast %513 : vector<1x32xf32> to vector<2x32xf32>
    %527 = arith.mulf %524, %526 : vector<2x32xf32>
    %528 = vector.broadcast %514 : vector<1x32xf32> to vector<2x32xf32>
    %529 = arith.mulf %525, %528 : vector<2x32xf32>
    %530 = arith.addf %527, %529 : vector<2x32xf32>
    %cst_77 = arith.constant dense<0.000000e+00> : vector<2xf32>
    %531 = vector.multi_reduction <add>, %530, %cst_77 [1] : vector<2x32xf32> to vector<2xf32>
    %532 = vector.shape_cast %531 : vector<2xf32> to vector<2x1xf32>
    %533 = vector.extract_strided_slice %449 {offsets = [0, 0], sizes = [2, 32], strides = [1, 1]} : vector<2x64xf32> to vector<2x32xf32>
    %534 = vector.extract_strided_slice %470 {offsets = [0, 32], sizes = [2, 32], strides = [1, 1]} : vector<2x64xf32> to vector<2x32xf32>
    %535 = vector.broadcast %513 : vector<1x32xf32> to vector<2x32xf32>
    %536 = arith.mulf %533, %535 : vector<2x32xf32>
    %537 = vector.broadcast %514 : vector<1x32xf32> to vector<2x32xf32>
    %538 = arith.mulf %534, %537 : vector<2x32xf32>
    %539 = arith.addf %536, %538 : vector<2x32xf32>
    %cst_78 = arith.constant dense<0.000000e+00> : vector<2xf32>
    %540 = vector.multi_reduction <add>, %539, %cst_78 [1] : vector<2x32xf32> to vector<2xf32>
    %541 = vector.shape_cast %540 : vector<2xf32> to vector<2x1xf32>
    %542 = vector.extract_strided_slice %470 {offsets = [0, 0], sizes = [2, 32], strides = [1, 1]} : vector<2x64xf32> to vector<2x32xf32>
    %543 = vector.extract_strided_slice %449 {offsets = [0, 32], sizes = [2, 32], strides = [1, 1]} : vector<2x64xf32> to vector<2x32xf32>
    %544 = vector.broadcast %513 : vector<1x32xf32> to vector<2x32xf32>
    %545 = arith.mulf %542, %544 : vector<2x32xf32>
    %546 = vector.broadcast %514 : vector<1x32xf32> to vector<2x32xf32>
    %547 = arith.mulf %543, %546 : vector<2x32xf32>
    %548 = arith.addf %545, %547 : vector<2x32xf32>
    %cst_79 = arith.constant dense<0.000000e+00> : vector<2xf32>
    %549 = vector.multi_reduction <add>, %548, %cst_79 [1] : vector<2x32xf32> to vector<2xf32>
    %550 = vector.shape_cast %549 : vector<2xf32> to vector<2x1xf32>
    %551 = vector.extract_strided_slice %491 {offsets = [0, 0], sizes = [2, 32], strides = [1, 1]} : vector<2x64xf32> to vector<2x32xf32>
    %552 = vector.extract_strided_slice %428 {offsets = [0, 32], sizes = [2, 32], strides = [1, 1]} : vector<2x64xf32> to vector<2x32xf32>
    %553 = vector.broadcast %513 : vector<1x32xf32> to vector<2x32xf32>
    %554 = arith.mulf %551, %553 : vector<2x32xf32>
    %555 = vector.broadcast %514 : vector<1x32xf32> to vector<2x32xf32>
    %556 = arith.mulf %552, %555 : vector<2x32xf32>
    %557 = arith.addf %554, %556 : vector<2x32xf32>
    %cst_80 = arith.constant dense<0.000000e+00> : vector<2xf32>
    %558 = vector.multi_reduction <add>, %557, %cst_80 [1] : vector<2x32xf32> to vector<2xf32>
    %559 = vector.shape_cast %558 : vector<2xf32> to vector<2x1xf32>
    %560 = vector.extract_strided_slice %512 {offsets = [0, 0], sizes = [2, 32], strides = [1, 1]} : vector<2x64xf32> to vector<2x32xf32>
    %561 = vector.extract_strided_slice %407 {offsets = [0, 32], sizes = [2, 32], strides = [1, 1]} : vector<2x64xf32> to vector<2x32xf32>
    %562 = vector.broadcast %513 : vector<1x32xf32> to vector<2x32xf32>
    %563 = arith.mulf %560, %562 : vector<2x32xf32>
    %564 = vector.broadcast %514 : vector<1x32xf32> to vector<2x32xf32>
    %565 = arith.mulf %561, %564 : vector<2x32xf32>
    %566 = arith.addf %563, %565 : vector<2x32xf32>
    %cst_81 = arith.constant dense<0.000000e+00> : vector<2xf32>
    %567 = vector.multi_reduction <add>, %566, %cst_81 [1] : vector<2x32xf32> to vector<2xf32>
    %568 = vector.shape_cast %567 : vector<2xf32> to vector<2x1xf32>
    %569 = tpu.concatenate %523, %532, %541, %550, %559, %568 in 1 : vector<2x1xf32>, vector<2x1xf32>, vector<2x1xf32>, vector<2x1xf32>, vector<2x1xf32>, vector<2x1xf32> -> vector<2x6xf32>
    %c0_82 = arith.constant 0 : index
    %c0_83 = arith.constant 0 : index
    %570 = vector.load %arg11[%c0_82, %c0_83] : memref<1x1xf32, #tpu.memory_space<vmem>>, vector<1x1xf32>
    %571 = vector.broadcast %570 : vector<1x1xf32> to vector<2x6xf32>
    %572 = arith.addf %569, %571 : vector<2x6xf32>
    %573 = arith.negf %572 : vector<2x6xf32>
    %574 = math.exp %573 : vector<2x6xf32>
    %cst_84 = arith.constant 1.000000e+00 : f32
    %575 = vector.broadcast %cst_84 : f32 to vector<2x6xf32>
    %576 = arith.addf %575, %574 : vector<2x6xf32>
    %577 = arith.divf %575, %576 : vector<2x6xf32>
    %c0_85 = arith.constant 0 : index
    %c0_86 = arith.constant 0 : index
    %578 = vector.load %arg12[%c0_85, %c0_86] : memref<2x6xf32, #tpu.memory_space<vmem>>, vector<2x6xf32>
    tpu.vector_store %arg12[%c0_85, %c0_86], %577 {strides = array<i32>} : memref<2x6xf32, #tpu.memory_space<vmem>>, vector<2x6xf32>,
    return
  }
}

</mosaic_0001>

<bundles_post_ra>
// kernel: e2e_forward.1
= control target key start
LH: loop header
LB: loop body
LE: loop exit
PB: predicated region body
PF: predicated region fallthrough
CT: control target
= control target key end

     0   :  { %s5286_s0 = inlined_call_operand.vmem [shape: f32[2,40], index: 0, kind: input, shape index: {}]   ;;  %s5287_s1 = inlined_call_operand.vmem [shape: f32[8,192], index: 1, kind: input, shape index: {}]   ;;  %s5288_s2 = inlined_call_operand.vmem [shape: f32[64,192], index: 2, kind: input, shape index: {}]   ;;  %s5289_s3 = inlined_call_operand.vmem [shape: f32[1,192], index: 3, kind: input, shape index: {}]   ;;  %s5290_s4 = inlined_call_operand.vmem [shape: f32[1,64], index: 4, kind: input, shape index: {}]   ;;  %s5291_s5 = inlined_call_operand.vmem [shape: f32[128,192], index: 5, kind: input, shape index: {}]   ;;  %s5292_s6 = inlined_call_operand.vmem [shape: f32[64,192], index: 6, kind: input, shape index: {}]   ;;  %s5293_s7 = inlined_call_operand.vmem [shape: f32[1,192], index: 7, kind: input, shape index: {}]   ;;  %s5294_s8 = inlined_call_operand.vmem [shape: f32[1,64], index: 8, kind: input, shape index: {}]   ;;  %s5295_s9 = inlined_call_operand.vmem [shape: f32[1,32], index: 9, kind: input, shape index: {}]   ;;  %s5296_s10 = inlined_call_operand.vmem [shape: f32[1,32], index: 10, kind: input, shape index: {}]   ;;  %s5297_s11 = inlined_call_operand.<no memory space> [shape: f32[1,1], index: 11, kind: input, shape index: {}]   ;;  %s5298_s12 = inlined_call_operand.hbm [shape: f32[2,6], index: 12, kind: output, shape index: {}]  }
   0x1   :  { %v17_v0 = vstv %s5297_s11 }
   0x2   :  { %18 = vst [vmem:[#allocation2] sm:$0x1] %v17_v0 }
   0x3   :  { %v4259_v1 = vld [vmem:[%s5286_s0] sm:$0x3]  ;;  %v4264_v2 = vld [vmem:[%s5287_s1 + $0x8] sm:$0xff]  ;;  %s4173_s29 = smov 96   ;;  %s4174_s11 = smov 104   ;;  %v4175_v4 = vmov 0.0  }
   0x4   :  { %v4269_v3 = vld [vmem:[%s5287_s1] sm:$0xff]  ;;  %66 = vrot.lane.b32.xlu0 %v4259_v1, %s4173_s29  ;;  %241 = vrot.lane.b32.xlu1 %v4259_v1, %s4174_s11 }
   0x5   :  { %86 = vmatprep.subr.mxu0 %v4264_v2  ;;  %150 = vmatprep.mubr.f32.mxu0 %v4175_v4 }
   0x6   :  { %87 = vmatpush1.msra.mxu0 %v4269_v3  ;;  %167 = vmatprep.subr.mxu1 %v4264_v2 }
   0x7   :  { %19 = vsyncpa [#allocation4], 0  ;;  %248 = vmatprep.subr.mxu0 %v4264_v2  ;;  %168 = vmatpush1.msra.mxu1 %v4269_v3  ;;  %s4176_s0 = smov 120   ;;  %s4177_s1 = smov 112   ;;  %vm69_vm0 = vcmask 31744   ;;  %vm82_vm1 = vcmask 64512   ;;  %v72_v45 = vlaneseq }
   0x8   :  { %238 = vrot.lane.b32.xlu0 %v4259_v1, %s4176_s0  ;;  %400 = vrot.lane.b32.xlu1 %v4259_v1, %s4177_s1  ;;  %v48_v11 = vld [vmem:[%s5288_s2 + $0x8] sm:$0xff]  ;;  %v50_v12 = vld [vmem:[%s5288_s2 + $0x18] sm:$0xff]  ;;  %s4179_s24 = smov 116   ;;  %s4180_s25 = smov 92   ;;  %vm858_vm2 = vcmask 523264   ;;  %vm1882_vm3 = vcmask 261120  }
   0x9   :  { %231 = vmatprep.mubr.f32.mxu1 %v4175_v4  ;;  %329 = vmatprep.subr.mxu1 %v4264_v2  ;;  %v4305_v13 = vpack.c.bf16 %v50_v12, %v48_v11  ;;  %v47_v14 = vld [vmem:[%s5288_s2] sm:$0xff]  ;;  %v49_v15 = vld [vmem:[%s5288_s2 + $0x10] sm:$0xff]  ;;  %v52_v17 = vld [vmem:[%s5288_s2 + $0x28] sm:$0xff]  ;;  %v4409_v48 = vshrl.u32 %v72_v45, 7  ;;  %s4182_s0 = smov 100   ;;  %s4184_s1 = smov 4  }
   0xa   :  { %v54_v18 = vld [vmem:[%s5288_s2 + $0x38] sm:$0xff]  ;;  %v4323_v19 = vpack.c.bf16 %v49_v15, %v47_v14  ;;  %v51_v21 = vld [vmem:[%s5288_s2 + $0x20] sm:$0xff]  ;;  %v53_v22 = vld [vmem:[%s5288_s2 + $0x30] sm:$0xff]  ;;  %vm1885_vm4 = vcmask 785408   ;;  %s4185_s21 = smov 32   ;;  %vm3305_vm5 = vcmask 254976  }
   0xb   :  { %v4326_v20 = vpack.c.bf16 %v54_v18, %v52_v17  ;;  %v56_v24 = vld [vmem:[%s5288_s2 + $0x48] sm:$0xff]  ;;  %v58_v25 = vld [vmem:[%s5288_s2 + $0x58] sm:$0xff]  ;;  %v4344_v26 = vpack.c.bf16 %v53_v22, %v51_v21  ;;  %v55_v28 = vld [vmem:[%s5288_s2 + $0x40] sm:$0xff]  ;;  %v74_v49 = vsub.s32 0, %v4409_v48  ;;  %v78_v59 = vsub.s32 1, %v4409_v48 }
   0xc   :  { %v4348_v27 = vpack.c.bf16 %v58_v25, %v56_v24  ;;  %v57_v29 = vld [vmem:[%s5288_s2 + $0x50] sm:$0xff]  ;;  %v60_v30 = vld [vmem:[%s5288_s2 + $0x68] sm:$0xff]  ;;  %v62_v31 = vld [vmem:[%s5288_s2 + $0x78] sm:$0xff]  ;;  %vm3359_vm6 = vcmask 7168   ;;  %vm3361_vm7 = vcmask 15360   ;;  %vm3363_vm8 = vcmask 23552  }
   0xd   :  { %v4363_v32 = vpack.c.bf16 %v57_v29, %v55_v28  ;;  %v4366_v33 = vpack.c.bf16 %v62_v31, %v60_v30  ;;  %v59_v34 = vld [vmem:[%s5288_s2 + $0x60] sm:$0xff]  ;;  %v61_v35 = vld [vmem:[%s5288_s2 + $0x70] sm:$0xff]  ;;  %s4178_s2 = smov 124   ;;  %vm3366_vm9 = vcmask 39936   ;;  %vm3385_vm10 = vcmask 41984  }
   0xe   :  { %v4375_v36 = vpack.c.bf16 %v61_v35, %v59_v34  ;;  %157 = vrot.lane.b32.xlu1 %v4259_v1, %s4178_s2  ;;  %v63_v50 = vld [vmem:[%s5289_s3] sm:$0x3]  ;;  %s4181_s3 = smov 64  }
   0xf   :  { %v4417_v51 = vrot.slane %v63_v50, %v74_v49  ;;  %v4424_v60 = vld [vmem:[%s5290_s4] ss:$0 sm:$0xff]  ;;  %v4428_v61 = vrot.slane %v63_v50, %v78_v59  ;;  %s4183_s4 = smov 108  }
  0x12   :  { %319 = vrot.lane.b32.xlu1 %v4259_v1, %s4179_s24 }
  0x16   :  { %777 = vrot.lane.b32.xlu1 %v4259_v1, %s4180_s25 }
  0x76   :  { %v67_v5 = vpop.permute.xlu0 %66  ;;  %v242_v7 = vpop.permute.xlu1 %241 }
  0x77   :  { %v70_v6 = vsel %vm69_vm0, %v4259_v1, %v67_v5  ;;  %v702_v23 = vsel %vm69_vm0, %v67_v5, %v4259_v1 }
  0x78   :  { %3401 = vmatmul.mubr.msk.f32.vlgmr.msra.gmra.mrb[0].mxu0 %vm82_vm1, %v70_v6 }
  0x79   :  { %249 = vmatpush1.msra.mxu0 %v4269_v3  ;;  %312 = vmatprep.mubr.f32.mxu0 %v4175_v4 }
  0x7a   :  { %v239_v8 = vpop.permute.xlu0 %238  ;;  %406 = vmatprep.subr.mxu0 %v4264_v2  ;;  %v401_v10 = vpop.permute.xlu1 %400 }
  0x7b   :  { %v244_v9 = vsel %vm69_vm0, %v239_v8, %v242_v7  ;;  %v552_v16 = vsel %vm69_vm0, %v242_v7, %v239_v8 }
  0x7c   :  { %3403 = vmatmul.mubr.msk.f32.vlgmr.msra.gmra.mrb[2].mxu0 %vm82_vm1, %v244_v9 }
  0x7d   :  { %407 = vmatpush1.msra.mxu0 %v4269_v3  ;;  %470 = vmatprep.mubr.f32.mxu0 %v4175_v4 }
  0x7e   :  { %556 = vmatprep.subr.mxu0 %v4264_v2 }
  0x80   :  { %3405 = vmatmul.mubr.msk.f32.vlgmr.msra.gmra.mrb[4].mxu0 %vm82_vm1, %v401_v10  ;;  %v158_v10 = vpop.permute.xlu1 %157 }
  0x81   :  { %557 = vmatpush1.msra.mxu0 %v4269_v3  ;;  %620 = vmatprep.mubr.f32.mxu0 %v4175_v4 }
  0x82   :  { %706 = vmatprep.subr.mxu0 %v4264_v2 }
  0x84   :  { %3407 = vmatmul.mubr.msk.f32.vlgmr.msra.gmra.mrb[6].mxu0 %vm82_vm1, %v552_v16  ;;  %v320_v15 = vpop.permute.xlu1 %319 }
  0x85   :  { %707 = vmatpush1.msra.mxu0 %v4269_v3  ;;  %770 = vmatprep.mubr.f32.mxu0 %v4175_v4 }
  0x86   :  { %3452 = vmatprep.subr.bf16.mxu0 %v4305_v13 }
  0x88   :  { %3409 = vmatmul.mubr.msk.f32.vlgmr.msra.gmra.mrb[8].mxu0 %vm82_vm1, %v702_v23  ;;  %v778_v21 = vpop.permute.xlu1 %777 }
  0x89   :  { %3454 = vmatpush1.bf16.msra.mxu0 %v4323_v19  ;;  %926 = vmatprep.mubr.f32.mxu0 %v4175_v4 }
  0x8a   :  { %3456 = vmatprep.subr.bf16.mxu0 %v4326_v20 }
  0x8d   :  { %3458 = vmatpush1.bf16.msra.mxu0 %v4344_v26 }
  0x8e   :  { %3460 = vmatprep.subr.bf16.mxu0 %v4348_v27 }
  0x91   :  { %3462 = vmatpush1.bf16.msra.mxu0 %v4363_v32 }
  0x92   :  { %3464 = vmatprep.subr.bf16.mxu0 %v4366_v33 }
  0x95   :  { %3466 = vmatpush1.bf16.msra.mxu0 %v4375_v36 }
  0x96   :  { %3484 = vmatprep.subr.bf16.mxu0 %v4305_v13 }
  0x98   :  { %927 = vmatmul.mubr.f32.vlgmr.msra.gmra.mrb[10].mxu0 %v4175_v4 }
  0x99   :  { %3486 = vmatpush1.bf16.msra.mxu0 %v4323_v19  ;;  %1124 = vmatprep.mubr.f32.mxu0 %v4175_v4 }
  0x9a   :  { %3488 = vmatprep.subr.bf16.mxu0 %v4326_v20 }
  0x9d   :  { %3490 = vmatpush1.bf16.msra.mxu0 %v4344_v26 }
  0x9e   :  { %3492 = vmatprep.subr.bf16.mxu0 %v4348_v27 }
  0xa1   :  { %3494 = vmatpush1.bf16.msra.mxu0 %v4363_v32 }
  0xa2   :  { %3496 = vmatprep.subr.bf16.mxu0 %v4366_v33 }
  0xa5   :  { %3498 = vmatpush1.bf16.msra.mxu0 %v4375_v36 }
  0xa6   :  { %3516 = vmatprep.subr.bf16.mxu0 %v4305_v13 }
 0x14b   :  { %v152_v37 = vpop.f32.mrb[0].mxu0 }
 0x14c   :  { %v154_v38 = vpop.f32.mrb[1].mxu0  ;;  %v153_v52 = vadd.f32 %v152_v37, %v4417_v51 }
 0x14d   :  { %v155_v0 = vadd.f32 %v154_v38, %v4428_v61 }
 0x14f   :  { %v4393_v39 = vpop.f32.mrb[2].mxu0 }
 0x150   :  { %v4395_v40 = vpop.f32.mrb[3].mxu0 }
 0x153   :  { %v4397_v41 = vpop.f32.mrb[4].mxu0 }
 0x154   :  { %v4399_v42 = vpop.f32.mrb[5].mxu0 }
 0x157   :  { %v4401_v43 = vpop.f32.mrb[6].mxu0 }
 0x158   :  { %v4403_v44 = vpop.f32.mrb[7].mxu0 }
 0x15b   :  { %v4405_v46 = vpop.f32.mrb[8].mxu0 }
 0x15c   :  { %v4407_v47 = vpop.f32.mrb[9].mxu0 }
 0x16b   :  { %v928_v53 = vpop.f32.mrb[10].mxu0 }
 0x16c   :  { %v933_v54 = vadd.f32 %v928_v53, %v153_v52  ;;  %v930_v55 = vpop.f32.mrb[11].mxu0 }
 0x16d   :  { %v946_v62 = vadd.f32 %v4424_v60, %v930_v55 }
 0x16e   :  { %v3411_v56 = vmul.f32 -1.442695, %v933_v54 }
 0x170   :  { %4037 = vpow2.f32 %v3411_v56 }
 0x17a   :  { %v4038_v57 = vpop.eup %4037 }
 0x17b   :  { %v937_v58 = vadd.f32 1.0, %v4038_v57 }
 0x17d   :  { %4039 = vrcp.f32 %v937_v58 }
 0x187   :  { %v4040_v63 = vpop.eup %4039 }
 0x188   :  { %v947_v5 = vmul.f32 %v4040_v63, %v946_v62 }
 0x18a   :  { %v948_v6 = vadd.f32 %v947_v5, %v155_v0 }
 0x18c   :  { %4041 = vtanh.f32 %v948_v6 }
 0x196   :  { %v4042_v7 = vpop.eup %4041 }
 0x197   :  { %v950_v8 = vsub.f32 0.0, %v4042_v7 }
 0x199   :  { %952 = vrot.lane.b32.xlu0 %v950_v8, %s4181_s3 }
 0x19d   :  { %160 = vrot.lane.b32.xlu0 %v4259_v1, %s4182_s0 }
 0x1a1   :  { %322 = vrot.lane.b32.xlu0 %v4259_v1, %s4183_s4 }
 0x1a5   :  { %780 = vrot.lane.b32.xlu0 %v4259_v1, %s4184_s1 }
 0x20b   :  { %v953_v9 = vpop.permute.xlu0 %952 }
 0x20c   :  { %v955_v11 = vmul.f32 %v4040_v63, %v953_v9 }
 0x20e   :  { %957 = vrot.lane.b32.xlu1 %v955_v11, %s4181_s3  ;;  %v315_v11 = vadd.f32 %v4393_v39, %v4417_v51 }
 0x20f   :  { %v161_v12 = vpop.permute.xlu0 %160 }
 0x210   :  { %v163_v14 = vsel %vm69_vm0, %v158_v10, %v161_v12  ;;  %v627_v18 = vsel %vm69_vm0, %v161_v12, %v158_v10 }
 0x211   :  { %3402 = vmatmul.mubr.msk.f32.vlgmr.msra.gmra.mrb[0].mxu1 %vm82_vm1, %v163_v14 }
 0x212   :  { %330 = vmatpush1.msra.mxu1 %v4269_v3  ;;  %393 = vmatprep.mubr.f32.mxu1 %v4175_v4 }
 0x213   :  { %v323_v16 = vpop.permute.xlu0 %322  ;;  %481 = vmatprep.subr.mxu1 %v4264_v2 }
 0x214   :  { %v325_v1 = vsel %vm69_vm0, %v320_v15, %v323_v16  ;;  %v477_v17 = vsel %vm69_vm0, %v323_v16, %v320_v15 }
 0x215   :  { %3404 = vmatmul.mubr.msk.f32.vlgmr.msra.gmra.mrb[2].mxu1 %vm82_vm1, %v325_v1 }
 0x216   :  { %482 = vmatpush1.msra.mxu1 %v4269_v3  ;;  %545 = vmatprep.mubr.f32.mxu1 %v4175_v4 }
 0x217   :  { %631 = vmatprep.subr.mxu1 %v4264_v2  ;;  %v781_v22 = vpop.permute.xlu0 %780 }
 0x218   :  { %v783_v23 = vsel %vm69_vm0, %v778_v21, %v781_v22  ;;  %v317_v22 = vadd.f32 %v4395_v40, %v4428_v61 }
 0x219   :  { %3406 = vmatmul.mubr.msk.f32.vlgmr.msra.gmra.mrb[4].mxu1 %vm82_vm1, %v477_v17 }
 0x21a   :  { %632 = vmatpush1.msra.mxu1 %v4269_v3  ;;  %695 = vmatprep.mubr.f32.mxu1 %v4175_v4 }
 0x21b   :  { %787 = vmatprep.subr.mxu1 %v4264_v2 }
 0x21d   :  { %3408 = vmatmul.mubr.msk.f32.vlgmr.msra.gmra.mrb[6].mxu1 %vm82_vm1, %v627_v18 }
 0x21e   :  { %788 = vmatpush1.msra.mxu1 %v4269_v3  ;;  %851 = vmatprep.mubr.f32.mxu1 %v4175_v4 }
 0x21f   :  { %3468 = vmatprep.subr.bf16.mxu1 %v4305_v13 }
 0x221   :  { %3410 = vmatmul.mubr.msk.f32.vlgmr.msra.gmra.mrb[8].mxu1 %vm82_vm1, %v783_v23 }
 0x222   :  { %3470 = vmatpush1.bf16.msra.mxu1 %v4323_v19  ;;  %1028 = vmatprep.mubr.f32.mxu1 %v4175_v4 }
 0x223   :  { %3472 = vmatprep.subr.bf16.mxu1 %v4326_v20 }
 0x226   :  { %3474 = vmatpush1.bf16.msra.mxu1 %v4344_v26 }
 0x227   :  { %3476 = vmatprep.subr.bf16.mxu1 %v4348_v27 }
 0x22a   :  { %3478 = vmatpush1.bf16.msra.mxu1 %v4363_v32 }
 0x22b   :  { %3480 = vmatprep.subr.bf16.mxu1 %v4366_v33 }
 0x22e   :  { %3482 = vmatpush1.bf16.msra.mxu1 %v4375_v36 }
 0x22f   :  { %3500 = vmatprep.subr.bf16.mxu1 %v4305_v13 }
 0x280   :  { %v958_v2 = vpop.permute.xlu1 %957 }
 0x281   :  { %v4468_v3 = vadd.f32 %v4042_v7, %v958_v2 }
 0x283   :  { %3413 = vmatmul.mubr.msk.f32.vlgmr.msra.gmra.mrb[10].mxu1 %vm858_vm2, %v4468_v3 }
 0x284   :  { %3502 = vmatpush1.bf16.msra.mxu1 %v4323_v19  ;;  %1220 = vmatprep.mubr.f32.mxu1 %v4175_v4 }
 0x285   :  { %3504 = vmatprep.subr.bf16.mxu1 %v4326_v20 }
 0x288   :  { %3506 = vmatpush1.bf16.msra.mxu1 %v4344_v26 }
 0x289   :  { %3508 = vmatprep.subr.bf16.mxu1 %v4348_v27 }
 0x28c   :  { %3510 = vmatpush1.bf16.msra.mxu1 %v4363_v32 }
 0x28d   :  { %3512 = vmatprep.subr.bf16.mxu1 %v4366_v33 }
 0x290   :  { %3514 = vmatpush1.bf16.msra.mxu1 %v4375_v36 }
 0x291   :  { %3532 = vmatprep.subr.bf16.mxu1 %v4305_v13 }
 0x2e4   :  { %v233_v24 = vpop.f32.mrb[0].mxu1 }
 0x2e5   :  { %v235_v25 = vpop.f32.mrb[1].mxu1  ;;  %v234_v45 = vadd.f32 %v233_v24, %v4417_v51 }
 0x2e6   :  { %v236_v62 = vadd.f32 %v235_v25, %v4428_v61 }
 0x2e8   :  { %v4481_v28 = vpop.f32.mrb[2].mxu1 }
 0x2e9   :  { %v4483_v29 = vpop.f32.mrb[3].mxu1  ;;  %v396_v40 = vadd.f32 %v4481_v28, %v4417_v51 }
 0x2ec   :  { %v4485_v30 = vpop.f32.mrb[4].mxu1 }
 0x2ed   :  { %v4487_v31 = vpop.f32.mrb[5].mxu1 }
 0x2f0   :  { %v4489_v34 = vpop.f32.mrb[6].mxu1 }
 0x2f1   :  { %v4491_v35 = vpop.f32.mrb[7].mxu1 }
 0x2f4   :  { %v4493_v37 = vpop.f32.mrb[8].mxu1 }
 0x2f5   :  { %v4495_v38 = vpop.f32.mrb[9].mxu1 }
 0x356   :  { %v1030_v50 = vpop.f32.mrb[10].mxu1 }
 0x357   :  { %v1035_v52 = vadd.f32 %v1030_v50, %v234_v45  ;;  %v1032_v53 = vpop.f32.mrb[11].mxu1 }
 0x358   :  { %v1042_v57 = vadd.f32 %v4424_v60, %v1032_v53 }
 0x359   :  { %v3414_v54 = vmul.f32 -1.442695, %v1035_v52 }
 0x35b   :  { %4043 = vpow2.f32 %v3414_v54 }
 0x365   :  { %v4044_v55 = vpop.eup %4043 }
 0x366   :  { %v1039_v56 = vadd.f32 1.0, %v4044_v55 }
 0x368   :  { %4045 = vrcp.f32 %v1039_v56 }
 0x372   :  { %v4046_v58 = vpop.eup %4045 }
 0x373   :  { %v1043_v63 = vmul.f32 %v4046_v58, %v1042_v57 }
 0x375   :  { %v1044_v0 = vadd.f32 %v1043_v63, %v236_v62 }
 0x377   :  { %4047 = vtanh.f32 %v1044_v0  ;;  %v398_v0 = vadd.f32 %v4483_v29, %v4428_v61  ;;  %v473_v29 = vadd.f32 %v4397_v41, %v4417_v51 }
 0x381   :  { %v4048_v5 = vpop.eup %4047 }
 0x382   :  { %v1046_v6 = vsub.f32 %v4468_v3, %v4048_v5 }
 0x384   :  { %1048 = vrot.lane.b32.xlu0 %v1046_v6, %s4181_s3 }
 0x3f6   :  { %v1049_v7 = vpop.permute.xlu0 %1048 }
 0x3f7   :  { %v1051_v8 = vmul.f32 %v4046_v58, %v1049_v7 }
 0x3f9   :  { %1053 = vrot.lane.b32.xlu1 %v1051_v8, %s4181_s3 }
 0x46b   :  { %v1054_v9 = vpop.permute.xlu1 %1053 }
 0x46c   :  { %v4503_v10 = vadd.f32 %v4048_v5, %v1054_v9 }
 0x46e   :  { %3415 = vmatmul.mubr.msk.f32.vlgmr.msra.gmra.mrb[12].mxu0 %vm858_vm2, %v4503_v10 }
 0x46f   :  { %3518 = vmatpush1.bf16.msra.mxu0 %v4323_v19  ;;  %1316 = vmatprep.mubr.f32.mxu0 %v4175_v4 }
 0x470   :  { %3520 = vmatprep.subr.bf16.mxu0 %v4326_v20 }
 0x473   :  { %3522 = vmatpush1.bf16.msra.mxu0 %v4344_v26 }
 0x474   :  { %3524 = vmatprep.subr.bf16.mxu0 %v4348_v27 }
 0x477   :  { %3526 = vmatpush1.bf16.msra.mxu0 %v4363_v32 }
 0x478   :  { %3528 = vmatprep.subr.bf16.mxu0 %v4366_v33 }
 0x47b   :  { %3530 = vmatpush1.bf16.msra.mxu0 %v4375_v36 }
 0x47c   :  { %3548 = vmatprep.subr.bf16.mxu0 %v4305_v13 }
 0x541   :  { %v1126_v12 = vpop.f32.mrb[12].mxu0 }
 0x542   :  { %v1131_v14 = vadd.f32 %v1126_v12, %v315_v11  ;;  %v1128_v15 = vpop.f32.mrb[13].mxu0 }
 0x543   :  { %v1138_v18 = vadd.f32 %v4424_v60, %v1128_v15 }
 0x544   :  { %v3416_v16 = vmul.f32 -1.442695, %v1131_v14 }
 0x546   :  { %4049 = vpow2.f32 %v3416_v16 }
 0x550   :  { %v4050_v1 = vpop.eup %4049 }
 0x551   :  { %v1135_v17 = vadd.f32 1.0, %v4050_v1 }
 0x553   :  { %4051 = vrcp.f32 %v1135_v17 }
 0x55d   :  { %v4052_v21 = vpop.eup %4051 }
 0x55e   :  { %v1139_v23 = vmul.f32 %v4052_v21, %v1138_v18 }
 0x560   :  { %v1140_v2 = vadd.f32 %v1139_v23, %v317_v22  ;;  %v475_v23 = vadd.f32 %v4399_v42, %v4428_v61  ;;  %v548_v42 = vadd.f32 %v4485_v30, %v4417_v51 }
 0x562   :  { %4053 = vtanh.f32 %v1140_v2 }
 0x56c   :  { %v4054_v24 = vpop.eup %4053 }
 0x56d   :  { %v1142_v39 = vsub.f32 %v4503_v10, %v4054_v24 }
 0x56f   :  { %1144 = vrot.lane.b32.xlu0 %v1142_v39, %s4181_s3 }
 0x5e1   :  { %v1145_v25 = vpop.permute.xlu0 %1144 }
 0x5e2   :  { %v1147_v45 = vmul.f32 %v4052_v21, %v1145_v25 }
 0x5e4   :  { %1149 = vrot.lane.b32.xlu1 %v1147_v45, %s4181_s3 }
 0x656   :  { %v1150_v50 = vpop.permute.xlu1 %1149 }
 0x657   :  { %v4524_v52 = vadd.f32 %v4054_v24, %v1150_v50 }
 0x659   :  { %3417 = vmatmul.mubr.msk.f32.vlgmr.msra.gmra.mrb[12].mxu1 %vm858_vm2, %v4524_v52 }
 0x65a   :  { %3534 = vmatpush1.bf16.msra.mxu1 %v4323_v19  ;;  %1412 = vmatprep.mubr.f32.mxu1 %v4175_v4 }
 0x65b   :  { %3536 = vmatprep.subr.bf16.mxu1 %v4326_v20 }
 0x65e   :  { %3538 = vmatpush1.bf16.msra.mxu1 %v4344_v26 }
 0x65f   :  { %3540 = vmatprep.subr.bf16.mxu1 %v4348_v27 }
 0x662   :  { %3542 = vmatpush1.bf16.msra.mxu1 %v4363_v32 }
 0x663   :  { %3544 = vmatprep.subr.bf16.mxu1 %v4366_v33 }
 0x666   :  { %3546 = vmatpush1.bf16.msra.mxu1 %v4375_v36 }
 0x667   :  { %3564 = vmatprep.subr.bf16.mxu1 %v4305_v13 }
 0x72c   :  { %v1222_v53 = vpop.f32.mrb[12].mxu1 }
 0x72d   :  { %v1227_v54 = vadd.f32 %v1222_v53, %v396_v40  ;;  %v1224_v55 = vpop.f32.mrb[13].mxu1 }
 0x72e   :  { %v1234_v62 = vadd.f32 %v4424_v60, %v1224_v55 }
 0x72f   :  { %v3418_v56 = vmul.f32 -1.442695, %v1227_v54 }
 0x731   :  { %4055 = vpow2.f32 %v3418_v56 }
 0x73b   :  { %v4056_v57 = vpop.eup %4055 }
 0x73c   :  { %v1231_v58 = vadd.f32 1.0, %v4056_v57 }
 0x73e   :  { %4057 = vrcp.f32 %v1231_v58 }
 0x748   :  { %v4058_v63 = vpop.eup %4057 }
 0x749   :  { %v1235_v5 = vmul.f32 %v4058_v63, %v1234_v62 }
 0x74b   :  { %v1236_v6 = vadd.f32 %v1235_v5, %v398_v0  ;;  %v550_v0 = vadd.f32 %v4487_v31, %v4428_v61  ;;  %v623_v31 = vadd.f32 %v4401_v43, %v4417_v51 }
 0x74d   :  { %4059 = vtanh.f32 %v1236_v6 }
 0x757   :  { %v4060_v7 = vpop.eup %4059 }
 0x758   :  { %v1238_v28 = vsub.f32 %v4524_v52, %v4060_v7 }
 0x75a   :  { %1240 = vrot.lane.b32.xlu0 %v1238_v28, %s4181_s3 }
 0x7cc   :  { %v1241_v8 = vpop.permute.xlu0 %1240 }
 0x7cd   :  { %v1243_v9 = vmul.f32 %v4058_v63, %v1241_v8 }
 0x7cf   :  { %1245 = vrot.lane.b32.xlu1 %v1243_v9, %s4181_s3 }
 0x841   :  { %v1246_v11 = vpop.permute.xlu1 %1245 }
 0x842   :  { %v4545_v12 = vadd.f32 %v4060_v7, %v1246_v11 }
 0x844   :  { %3419 = vmatmul.mubr.msk.f32.vlgmr.msra.gmra.mrb[14].mxu0 %vm858_vm2, %v4545_v12 }
 0x845   :  { %3550 = vmatpush1.bf16.msra.mxu0 %v4323_v19  ;;  %1508 = vmatprep.mubr.f32.mxu0 %v4175_v4 }
 0x846   :  { %3552 = vmatprep.subr.bf16.mxu0 %v4326_v20 }
 0x849   :  { %3554 = vmatpush1.bf16.msra.mxu0 %v4344_v26 }
 0x84a   :  { %3556 = vmatprep.subr.bf16.mxu0 %v4348_v27 }
 0x84d   :  { %3558 = vmatpush1.bf16.msra.mxu0 %v4363_v32 }
 0x84e   :  { %3560 = vmatprep.subr.bf16.mxu0 %v4366_v33 }
 0x851   :  { %3562 = vmatpush1.bf16.msra.mxu0 %v4375_v36 }
 0x852   :  { %3580 = vmatprep.subr.bf16.mxu0 %v4305_v13 }
 0x917   :  { %v1318_v14 = vpop.f32.mrb[14].mxu0 }
 0x918   :  { %v1323_v15 = vadd.f32 %v1318_v14, %v473_v29  ;;  %v1320_v16 = vpop.f32.mrb[15].mxu0 }
 0x919   :  { %v1330_v21 = vadd.f32 %v4424_v60, %v1320_v16 }
 0x91a   :  { %v3420_v1 = vmul.f32 -1.442695, %v1323_v15 }
 0x91c   :  { %4061 = vpow2.f32 %v3420_v1 }
 0x926   :  { %v4062_v17 = vpop.eup %4061 }
 0x927   :  { %v1327_v18 = vadd.f32 1.0, %v4062_v17 }
 0x929   :  { %4063 = vrcp.f32 %v1327_v18 }
 0x933   :  { %v4064_v22 = vpop.eup %4063 }
 0x934   :  { %v1331_v2 = vmul.f32 %v4064_v22, %v1330_v21  ;;  %v625_v21 = vadd.f32 %v4403_v44, %v4428_v61  ;;  %v698_v44 = vadd.f32 %v4489_v34, %v4417_v51 }
 0x936   :  { %v1332_v24 = vadd.f32 %v1331_v2, %v475_v23 }
 0x938   :  { %4065 = vtanh.f32 %v1332_v24 }
 0x942   :  { %v4066_v39 = vpop.eup %4065 }
 0x943   :  { %v1334_v41 = vsub.f32 %v4545_v12, %v4066_v39 }
 0x945   :  { %1336 = vrot.lane.b32.xlu0 %v1334_v41, %s4181_s3 }
 0x9b7   :  { %v1337_v25 = vpop.permute.xlu0 %1336 }
 0x9b8   :  { %v1339_v45 = vmul.f32 %v4064_v22, %v1337_v25 }
 0x9ba   :  { %1341 = vrot.lane.b32.xlu1 %v1339_v45, %s4181_s3 }
 0xa2c   :  { %v1342_v50 = vpop.permute.xlu1 %1341 }
 0xa2d   :  { %v4566_v40 = vadd.f32 %v4066_v39, %v1342_v50 }
 0xa2f   :  { %3421 = vmatmul.mubr.msk.f32.vlgmr.msra.gmra.mrb[14].mxu1 %vm858_vm2, %v4566_v40 }
 0xa30   :  { %3566 = vmatpush1.bf16.msra.mxu1 %v4323_v19  ;;  %1604 = vmatprep.mubr.f32.mxu1 %v4175_v4 }
 0xa31   :  { %3568 = vmatprep.subr.bf16.mxu1 %v4326_v20 }
 0xa34   :  { %3570 = vmatpush1.bf16.msra.mxu1 %v4344_v26 }
 0xa35   :  { %3572 = vmatprep.subr.bf16.mxu1 %v4348_v27 }
 0xa38   :  { %3574 = vmatpush1.bf16.msra.mxu1 %v4363_v32 }
 0xa39   :  { %3576 = vmatprep.subr.bf16.mxu1 %v4366_v33 }
 0xa3c   :  { %3578 = vmatpush1.bf16.msra.mxu1 %v4375_v36 }
 0xa3d   :  { %3596 = vmatprep.subr.bf16.mxu1 %v4305_v13 }
 0xb02   :  { %v1414_v53 = vpop.f32.mrb[14].mxu1 }
 0xb03   :  { %v1419_v54 = vadd.f32 %v1414_v53, %v548_v42  ;;  %v1416_v55 = vpop.f32.mrb[15].mxu1 }
 0xb04   :  { %v1426_v62 = vadd.f32 %v4424_v60, %v1416_v55 }
 0xb05   :  { %v3422_v56 = vmul.f32 -1.442695, %v1419_v54 }
 0xb07   :  { %4067 = vpow2.f32 %v3422_v56 }
 0xb11   :  { %v4068_v57 = vpop.eup %4067 }
 0xb12   :  { %v1423_v58 = vadd.f32 1.0, %v4068_v57 }
 0xb14   :  { %4069 = vrcp.f32 %v1423_v58 }
 0xb1e   :  { %v4070_v63 = vpop.eup %4069 }
 0xb1f   :  { %v1427_v5 = vmul.f32 %v4070_v63, %v1426_v62 }
 0xb21   :  { %v1428_v6 = vadd.f32 %v1427_v5, %v550_v0 }
 0xb23   :  { %4071 = vtanh.f32 %v1428_v6 }
 0xb2d   :  { %v4072_v13 = vpop.eup %4071 }
 0xb2e   :  { %v1430_v30 = vsub.f32 %v4566_v40, %v4072_v13 }
 0xb30   :  { %1432 = vrot.lane.b32.xlu0 %v1430_v30, %s4181_s3 }
 0xba2   :  { %v1433_v7 = vpop.permute.xlu0 %1432 }
 0xba3   :  { %v1435_v28 = vmul.f32 %v4070_v63, %v1433_v7 }
 0xba5   :  { %1437 = vrot.lane.b32.xlu1 %v1435_v28, %s4181_s3  ;;  %v775_v28 = vadd.f32 %v4407_v47, %v4428_v61  ;;  %v854_v47 = vadd.f32 %v4493_v37, %v4417_v51 }
 0xc17   :  { %v1438_v8 = vpop.permute.xlu1 %1437 }
 0xc18   :  { %v4587_v9 = vadd.f32 %v4072_v13, %v1438_v8 }
 0xc1a   :  { %3423 = vmatmul.mubr.msk.f32.vlgmr.msra.gmra.mrb[16].mxu0 %vm858_vm2, %v4587_v9 }
 0xc1b   :  { %3582 = vmatpush1.bf16.msra.mxu0 %v4323_v19  ;;  %1700 = vmatprep.mubr.f32.mxu0 %v4175_v4 }
 0xc1c   :  { %3584 = vmatprep.subr.bf16.mxu0 %v4326_v20 }
 0xc1f   :  { %3586 = vmatpush1.bf16.msra.mxu0 %v4344_v26 }
 0xc20   :  { %3588 = vmatprep.subr.bf16.mxu0 %v4348_v27 }
 0xc23   :  { %3590 = vmatpush1.bf16.msra.mxu0 %v4363_v32 }
 0xc24   :  { %3592 = vmatprep.subr.bf16.mxu0 %v4366_v33 }
 0xc27   :  { %3594 = vmatpush1.bf16.msra.mxu0 %v4375_v36 }
 0xced   :  { %v1510_v11 = vpop.f32.mrb[16].mxu0 }
 0xcee   :  { %v1515_v29 = vadd.f32 %v1510_v11, %v623_v31  ;;  %v1512_v14 = vpop.f32.mrb[17].mxu0 }
 0xcef   :  { %v1522_v17 = vadd.f32 %v4424_v60, %v1512_v14 }
 0xcf0   :  { %v3424_v15 = vmul.f32 -1.442695, %v1515_v29 }
 0xcf2   :  { %4073 = vpow2.f32 %v3424_v15 }
 0xcfc   :  { %v4074_v16 = vpop.eup %4073 }
 0xcfd   :  { %v1519_v1 = vadd.f32 1.0, %v4074_v16 }
 0xcff   :  { %4075 = vrcp.f32 %v1519_v1 }
 0xd09   :  { %v4076_v18 = vpop.eup %4075 }
 0xd0a   :  { %v1523_v22 = vmul.f32 %v4076_v18, %v1522_v17 }
 0xd0c   :  { %v1524_v23 = vadd.f32 %v1523_v22, %v625_v21 }
 0xd0e   :  { %4077 = vtanh.f32 %v1524_v23 }
 0xd18   :  { %v4078_v2 = vpop.eup %4077 }
 0xd19   :  { %v1526_v43 = vsub.f32 %v4587_v9, %v4078_v2 }
 0xd1b   :  { %1528 = vrot.lane.b32.xlu0 %v1526_v43, %s4181_s3 }
 0xd8d   :  { %v1529_v24 = vpop.permute.xlu0 %1528 }
 0xd8e   :  { %v1531_v39 = vmul.f32 %v4076_v18, %v1529_v24  ;;  %v856_v24 = vadd.f32 %v4495_v38, %v4428_v61  ;;  %v1825_v38 = vld [vmem:[%s5291_s5] sm:$0xff] }
 0xd90   :  { %1533 = vrot.lane.b32.xlu1 %v1531_v39, %s4181_s3 }
 0xe02   :  { %v1534_v41 = vpop.permute.xlu1 %1533 }
 0xe03   :  { %v4607_v25 = vadd.f32 %v4078_v2, %v1534_v41 }
 0xe05   :  { %3425 = vmatmul.mubr.msk.f32.vlgmr.msra.gmra.mrb[16].mxu1 %vm858_vm2, %v4607_v25 }
 0xe06   :  { %3598 = vmatpush1.bf16.msra.mxu1 %v4323_v19  ;;  %1796 = vmatprep.mubr.f32.mxu1 %v4175_v4 }
 0xe07   :  { %3600 = vmatprep.subr.bf16.mxu1 %v4326_v20 }
 0xe0a   :  { %3602 = vmatpush1.bf16.msra.mxu1 %v4344_v26 }
 0xe0b   :  { %3604 = vmatprep.subr.bf16.mxu1 %v4348_v27 }
 0xe0e   :  { %3606 = vmatpush1.bf16.msra.mxu1 %v4363_v32  ;;  %v700_v32 = vadd.f32 %v4491_v35, %v4428_v61  ;;  %v773_v35 = vadd.f32 %v4405_v46, %v4417_v51  ;;  %v1828_v61 = vld [vmem:[%s5291_s5 + $0x18] sm:$0xff] }
 0xe0f   :  { %3608 = vmatprep.subr.bf16.mxu1 %v4366_v33 }
 0xe12   :  { %3610 = vmatpush1.bf16.msra.mxu1 %v4375_v36 }
 0xed8   :  { %v1606_v45 = vpop.f32.mrb[16].mxu1 }
 0xed9   :  { %v1611_v50 = vadd.f32 %v1606_v45, %v698_v44  ;;  %v1608_v19 = vpop.f32.mrb[17].mxu1 }
 0xeda   :  { %v1618_v26 = vadd.f32 %v4424_v60, %v1608_v19  ;;  %v1827_v19 = vld [vmem:[%s5291_s5 + $0x10] sm:$0xff] }
 0xedb   :  { %v3426_v42 = vmul.f32 -1.442695, %v1611_v50 }
 0xedd   :  { %4079 = vpow2.f32 %v3426_v42  ;;  %v1830_v42 = vld [vmem:[%s5291_s5 + $0x28] sm:$0xff] }
 0xee7   :  { %v4080_v53 = vpop.eup %4079 }
 0xee8   :  { %v1615_v20 = vadd.f32 1.0, %v4080_v53  ;;  %v1832_v53 = vld [vmem:[%s5291_s5 + $0x38] sm:$0xff] }
 0xeea   :  { %4081 = vrcp.f32 %v1615_v20  ;;  %v4676_v20 = vpack.c.bf16 %v1827_v19, %v1825_v38 }
 0xef4   :  { %v4082_v27 = vpop.eup %4081 }
 0xef5   :  { %v1619_v33 = vmul.f32 %v4082_v27, %v1618_v26  ;;  %v4678_v26 = vpack.c.bf16 %v1832_v53, %v1830_v42 }
 0xef7   :  { %v1620_v54 = vadd.f32 %v1619_v33, %v700_v32  ;;  %v1831_v32 = vld [vmem:[%s5291_s5 + $0x30] sm:$0xff]  ;;  %v1834_v33 = vld [vmem:[%s5291_s5 + $0x48] sm:$0xff] }
 0xef9   :  { %4083 = vtanh.f32 %v1620_v54 }
 0xf03   :  { %v4084_v36 = vpop.eup %4083 }
 0xf04   :  { %v1622_v34 = vsub.f32 %v4607_v25, %v4084_v36 }
 0xf06   :  { %1624 = vrot.lane.b32.xlu0 %v1622_v34, %s4181_s3 }
 0xf78   :  { %v1625_v55 = vpop.permute.xlu0 %1624 }
 0xf79   :  { %v1627_v56 = vmul.f32 %v4082_v27, %v1625_v55  ;;  %v1829_v27 = vld [vmem:[%s5291_s5 + $0x20] sm:$0xff] }
 0xf7a   :  { %v4697_v34 = vpack.c.bf16 %v1831_v32, %v1829_v27  ;;  %v4020_v32 = vpack.i.bf16 %v4566_v40, %v4587_v9 }
 0xf7b   :  { %1629 = vrot.lane.b32.xlu1 %v1627_v56, %s4181_s3  ;;  %v1833_v56 = vld [vmem:[%s5291_s5 + $0x40] sm:$0xff] }
 0xfed   :  { %v1630_v57 = vpop.permute.xlu1 %1629 }
 0xfee   :  { %v4627_v58 = vadd.f32 %v4084_v36, %v1630_v57  ;;  %v1836_v36 = vld [vmem:[%s5291_s5 + $0x58] sm:$0xff]  ;;  %v1835_v57 = vld [vmem:[%s5291_s5 + $0x50] sm:$0xff] }
 0xfef   :  { %v4702_v55 = vpack.c.bf16 %v1836_v36, %v1834_v33 }
 0xff0   :  { %3427 = vmatmul.mubr.msk.f32.vlgmr.msra.gmra.mrb[18].mxu0 %vm858_vm2, %v4627_v58  ;;  %v4015_v54 = vpack.i.bf16 %v4524_v52, %v4627_v58  ;;  %v2437_v27 = vsel %vm1882_vm3, %v4627_v58, %v4524_v52 }
 0xff1   :  { %1962 = vmatprep.mubr.f32.mxu0 %v4175_v4 }
0x10c3   :  { %v1702_v62 = vpop.f32.mrb[18].mxu0 }
0x10c4   :  { %v1707_v63 = vadd.f32 %v1702_v62, %v773_v35  ;;  %v1704_v0 = vpop.f32.mrb[19].mxu0  ;;  %v1838_v35 = vld [vmem:[%s5291_s5 + $0x68] sm:$0xff]  ;;  %v1840_v62 = vld [vmem:[%s5291_s5 + $0x78] sm:$0xff] }
0x10c5   :  { %v1714_v30 = vadd.f32 %v4424_v60, %v1704_v0  ;;  %v4720_v0 = vpack.c.bf16 %v1835_v57, %v1833_v56 }
0x10c6   :  { %v3428_v5 = vmul.f32 -1.442695, %v1707_v63  ;;  %v4025_v63 = vpack.i.bf16 %v4607_v25, %v4545_v12 }
0x10c8   :  { %4085 = vpow2.f32 %v3428_v5  ;;  %v4725_v5 = vpack.c.bf16 %v1840_v62, %v1838_v35 }
0x10d2   :  { %v4086_v6 = vpop.eup %4085 }
0x10d3   :  { %v1711_v13 = vadd.f32 1.0, %v4086_v6  ;;  %v1837_v6 = vld [vmem:[%s5291_s5 + $0x60] sm:$0xff] }
0x10d5   :  { %4087 = vrcp.f32 %v1711_v13  ;;  %v1839_v13 = vld [vmem:[%s5291_s5 + $0x70] sm:$0xff] }
0x10df   :  { %v4088_v7 = vpop.eup %4087 }
0x10e0   :  { %v1715_v8 = vmul.f32 %v4088_v7, %v1714_v30  ;;  %v1842_v30 = vld [vmem:[%s5291_s5 + $0x88] sm:$0xff] }
0x10e2   :  { %v1716_v31 = vadd.f32 %v1715_v8, %v775_v28  ;;  %v4741_v28 = vpack.c.bf16 %v1839_v13, %v1837_v6 }
0x10e4   :  { %4089 = vtanh.f32 %v1716_v31  ;;  %v1841_v31 = vld [vmem:[%s5291_s5 + $0x80] sm:$0xff] }
0x10ee   :  { %v4090_v11 = vpop.eup %4089 }
0x10ef   :  { %v1718_v46 = vsub.f32 %v4627_v58, %v4090_v11 }
0x10f1   :  { %1720 = vrot.lane.b32.xlu0 %v1718_v46, %s4181_s3  ;;  %v1846_v46 = vld [vmem:[%s5291_s5 + $0xa8] sm:$0xff] }
0x1163   :  { %v1721_v29 = vpop.permute.xlu0 %1720 }
0x1164   :  { %v1723_v14 = vmul.f32 %v4088_v7, %v1721_v29  ;;  %v1844_v7 = vld [vmem:[%s5291_s5 + $0x98] sm:$0xff] }
0x1165   :  { %v4745_v8 = vpack.c.bf16 %v1844_v7, %v1842_v30  ;;  %v1848_v29 = vld [vmem:[%s5291_s5 + $0xb8] sm:$0xff] }
0x1166   :  { %1725 = vrot.lane.b32.xlu1 %v1723_v14, %s4181_s3 }
0x11d8   :  { %v1726_v15 = vpop.permute.xlu1 %1725 }
0x11d9   :  { %v4640_v16 = vadd.f32 %v4090_v11, %v1726_v15  ;;  %v1843_v11 = vld [vmem:[%s5291_s5 + $0x90] sm:$0xff]  ;;  %v4765_v15 = vpack.c.bf16 %v1848_v29, %v1846_v46 }
0x11da   :  { %v4761_v14 = vpack.c.bf16 %v1843_v11, %v1841_v31 }
0x11db   :  { %3429 = vmatmul.mubr.msk.f32.vlgmr.msra.gmra.mrb[18].mxu1 %vm858_vm2, %v4640_v16 }
0x11dc   :  { %2042 = vmatprep.mubr.f32.mxu1 %v4175_v4 }
0x12ae   :  { %v1798_v1 = vpop.f32.mrb[18].mxu1 }
0x12af   :  { %v1803_v17 = vadd.f32 %v1798_v1, %v854_v47  ;;  %v1800_v18 = vpop.f32.mrb[19].mxu1  ;;  %v1845_v47 = vld [vmem:[%s5291_s5 + $0xa0] sm:$0xff]  ;;  %v1847_v1 = vld [vmem:[%s5291_s5 + $0xb0] sm:$0xff] }
0x12b0   :  { %v1810_v2 = vadd.f32 %v4424_v60, %v1800_v18  ;;  %v1826_v60 = vld [vmem:[%s5291_s5 + $0x8] sm:$0xff]  ;;  %v1852_v18 = vld [vmem:[%s5291_s5 + $0xd8] sm:$0xff] }
0x12b1   :  { %v3430_v21 = vmul.f32 -1.442695, %v1803_v17  ;;  %v4665_v50 = vpack.c.bf16 %v1828_v61, %v1826_v60  ;;  %v1850_v17 = vld [vmem:[%s5291_s5 + $0xc8] sm:$0xff] }
0x12b3   :  { %4091 = vpow2.f32 %v3430_v21  ;;  %3612 = vmatprep.subr.bf16.mxu0 %v4665_v50  ;;  %3644 = vmatprep.subr.bf16.mxu1 %v4665_v50  ;;  %v4781_v21 = vpack.c.bf16 %v1847_v1, %v1845_v47 }
0x12b4   :  { %3614 = vmatpush1.bf16.msra.mxu0 %v4676_v20  ;;  %3646 = vmatpush1.bf16.msra.mxu1 %v4676_v20 }
0x12b5   :  { %3616 = vmatprep.subr.bf16.mxu0 %v4678_v26  ;;  %3648 = vmatprep.subr.bf16.mxu1 %v4678_v26 }
0x12b8   :  { %3618 = vmatpush1.bf16.msra.mxu0 %v4697_v34  ;;  %3650 = vmatpush1.bf16.msra.mxu1 %v4697_v34 }
0x12b9   :  { %3620 = vmatprep.subr.bf16.mxu0 %v4702_v55  ;;  %3652 = vmatprep.subr.bf16.mxu1 %v4702_v55 }
0x12bc   :  { %3622 = vmatpush1.bf16.msra.mxu0 %v4720_v0  ;;  %3654 = vmatpush1.bf16.msra.mxu1 %v4720_v0 }
0x12bd   :  { %v4092_v22 = vpop.eup %4091  ;;  %3624 = vmatprep.subr.bf16.mxu0 %v4725_v5  ;;  %3656 = vmatprep.subr.bf16.mxu1 %v4725_v5 }
0x12be   :  { %v1807_v23 = vadd.f32 1.0, %v4092_v22  ;;  %v4785_v22 = vpack.c.bf16 %v1852_v18, %v1850_v17 }
0x12c0   :  { %4093 = vrcp.f32 %v1807_v23  ;;  %3626 = vmatpush1.bf16.msra.mxu0 %v4741_v28  ;;  %3658 = vmatpush1.bf16.msra.mxu1 %v4741_v28  ;;  %v1849_v23 = vld [vmem:[%s5291_s5 + $0xc0] sm:$0xff] }
0x12c1   :  { %3628 = vmatprep.subr.bf16.mxu0 %v4745_v8  ;;  %3660 = vmatprep.subr.bf16.mxu1 %v4745_v8 }
0x12c4   :  { %3630 = vmatpush1.bf16.msra.mxu0 %v4761_v14  ;;  %3662 = vmatpush1.bf16.msra.mxu1 %v4761_v14 }
0x12c5   :  { %3632 = vmatprep.subr.bf16.mxu0 %v4765_v15  ;;  %3664 = vmatprep.subr.bf16.mxu1 %v4765_v15 }
0x12c8   :  { %3634 = vmatpush1.bf16.msra.mxu0 %v4781_v21  ;;  %3666 = vmatpush1.bf16.msra.mxu1 %v4781_v21 }
0x12c9   :  { %3636 = vmatprep.subr.bf16.mxu0 %v4785_v22  ;;  %3668 = vmatprep.subr.bf16.mxu1 %v4785_v22 }
0x12ca   :  { %v4094_v43 = vpop.eup %4093 }
0x12cb   :  { %v1811_v39 = vmul.f32 %v4094_v43, %v1810_v2  ;;  %v1851_v2 = vld [vmem:[%s5291_s5 + $0xd0] sm:$0xff] }
0x12cd   :  { %v1812_v41 = vadd.f32 %v1811_v39, %v856_v24  ;;  %v1856_v24 = vld [vmem:[%s5291_s5 + $0xf8] sm:$0xff]  ;;  %v4801_v39 = vpack.c.bf16 %v1851_v2, %v1849_v23  ;;  %v2215_v2 = vsel %vm1882_vm3, %v4566_v40, %v4587_v9 }
0x12cf   :  { %4095 = vtanh.f32 %v1812_v41  ;;  %3638 = vmatpush1.bf16.msra.mxu0 %v4801_v39  ;;  %3670 = vmatpush1.bf16.msra.mxu1 %v4801_v39 }
0x12d9   :  { %v4650_v44 = vpop.eup %4095 }
0x12da   :  { %v1814_v51 = vsub.f32 %v4640_v16, %v4650_v44 }
0x12dc   :  { %1816 = vrot.lane.b32.xlu0 %v1814_v51, %s4181_s3  ;;  %v1853_v51 = vld [vmem:[%s5291_s5 + $0xe0] sm:$0xff] }
0x134e   :  { %v1817_v37 = vpop.permute.xlu0 %1816 }
0x134f   :  { %v1819_v45 = vmul.f32 %v4094_v43, %v1817_v37  ;;  %v1854_v43 = vld [vmem:[%s5291_s5 + $0xe8] sm:$0xff]  ;;  %v1855_v37 = vld [vmem:[%s5291_s5 + $0xf0] sm:$0xff] }
0x1350   :  { %v4805_v41 = vpack.c.bf16 %v1856_v24, %v1854_v43 }
0x1351   :  { %1821 = vrot.lane.b32.xlu1 %v1819_v45, %s4181_s3  ;;  %v4818_v45 = vpack.c.bf16 %v1855_v37, %v1853_v51  ;;  %v2289_v51 = vsel %vm1882_vm3, %v4587_v9, %v4566_v40  ;;  %v1858_v40 = vld [vmem:[%s5292_s6 + $0x8] sm:$0xff]  ;;  %v1860_v9 = vld [vmem:[%s5292_s6 + $0x18] sm:$0xff] }
0x1352   :  { %3640 = vmatprep.subr.bf16.mxu0 %v4805_v41  ;;  %3672 = vmatprep.subr.bf16.mxu1 %v4805_v41 }
0x1353   :  { %3642 = vmatpush1.bf16.msra.mxu0 %v4818_v45  ;;  %3674 = vmatpush1.bf16.msra.mxu1 %v4818_v45 }
0x1354   :  { %3676 = vmatprep.subr.bf16.mxu0 %v4665_v50  ;;  %3708 = vmatprep.subr.bf16.mxu1 %v4665_v50 }
0x1355   :  { %4016 = vrot.lane.b32.xlu1 %v4015_v54, %s4181_s3  ;;  %v4030_v54 = vpack.i.bf16 %v4503_v10, %v4640_v16 }
0x1359   :  { %4026 = vrot.lane.b32.xlu1 %v4025_v63, %s4181_s3 }
0x13c3   :  { %v1822_v60 = vpop.permute.xlu1 %1821 }
0x13c4   :  { %v1824_v61 = vadd.f32 %v4650_v44, %v1822_v60 }
0x13c6   :  { %v4010_v38 = vpack.i.bf16 %v4468_v3, %v1824_v61  ;;  %v1883_v35 = vsel %vm1882_vm3, %v4468_v3, %v1824_v61  ;;  %v1975_v3 = vsel %vm1882_vm3, %v4503_v10, %v4640_v16  ;;  %v2055_v10 = vsel %vm1882_vm3, %v4524_v52, %v4627_v58 }
0x13c7   :  { %v4826_v19 = vpop.permute.xlu1 %4016  ;;  %v2135_v58 = vsel %vm1882_vm3, %v4545_v12, %v4607_v25 }
0x13c8   :  { %v4019_v42 = vunpack.i.h.bf16 %v4826_v19  ;;  %v4018_v53 = vunpack.i.l.bf16 %v4826_v19  ;;  %4011 = vrot.lane.b32.xlu0 %v4010_v38, %s4181_s3  ;;  %v1865_v38 = vld [vmem:[%s5292_s6 + $0x40] sm:$0xff]  ;;  %v1867_v19 = vld [vmem:[%s5292_s6 + $0x50] sm:$0xff] }
0x13ca   :  { %v2438_v44 = vsel %vm858_vm2, %v2437_v27, %v4019_v42  ;;  %v2056_v16 = vsel %vm858_vm2, %v2055_v10, %v4018_v53  ;;  %v1869_v27 = vld [vmem:[%s5292_s6 + $0x60] sm:$0xff] }
0x13cb   :  { %v4838_v33 = vsel %vm1885_vm4, %v2438_v44, %v4018_v53  ;;  %v4885_v46 = vpop.permute.xlu1 %4026  ;;  %v2057_v29 = vsel %vm1885_vm4, %v2056_v16, %v4019_v42  ;;  %v5051_v42 = vpack.c.bf16 %v1867_v19, %v1865_v38 }
0x13cc   :  { %4021 = vrot.lane.b32.xlu0 %v4020_v32, %s4181_s3  ;;  %v4029_v47 = vunpack.i.h.bf16 %v4885_v46  ;;  %v4028_v52 = vunpack.i.l.bf16 %v4885_v46  ;;  %v1871_v32 = vld [vmem:[%s5292_s6 + $0x70] sm:$0xff] }
0x13ce   :  { %v2136_v1 = vsel %vm858_vm2, %v2135_v58, %v4029_v47 }
0x13cf   :  { %v2137_v17 = vsel %vm1885_vm4, %v2136_v1, %v4028_v52 }
0x13d0   :  { %4031 = vrot.lane.b32.xlu0 %v4030_v54, %s4181_s3 }
0x143a   :  { %v4012_v36 = vpop.permute.xlu0 %4011 }
0x143b   :  { %v4014_v56 = vunpack.i.h.bf16 %v4012_v36  ;;  %v4013_v57 = vunpack.i.l.bf16 %v4012_v36 }
0x143d   :  { %v1884_v62 = vsel %vm858_vm2, %v1883_v35, %v4013_v57 }
0x143e   :  { %v4847_v63 = vpop.permute.xlu0 %4021  ;;  %v1886_v6 = vsel %vm1885_vm4, %v1884_v62, %v4014_v56 }
0x143f   :  { %1963 = vmatmul.mubr.f32.vlgmr.msra.gmra.mrb[20].mxu0 %v1886_v6  ;;  %v4023_v18 = vunpack.i.l.bf16 %v4847_v63  ;;  %v4024_v23 = vunpack.i.h.bf16 %v4847_v63 }
0x1440   :  { %3678 = vmatpush1.bf16.msra.mxu0 %v4676_v20  ;;  %2122 = vmatprep.mubr.f32.mxu0 %v4175_v4 }
0x1441   :  { %3680 = vmatprep.subr.bf16.mxu0 %v4678_v26  ;;  %v2216_v43 = vsel %vm858_vm2, %v2215_v2, %v4023_v18  ;;  %v2290_v37 = vsel %vm858_vm2, %v2289_v51, %v4024_v23 }
0x1442   :  { %v4032_v13 = vpop.permute.xlu0 %4031  ;;  %v2217_v24 = vsel %vm1885_vm4, %v2216_v43, %v4024_v23  ;;  %v2291_v60 = vsel %vm1885_vm4, %v2290_v37, %v4023_v18  ;;  %v5124_v18 = vld [vmem:[%s5294_s8] ss:$0 sm:$0xff] }
0x1443   :  { %v4034_v30 = vunpack.i.h.bf16 %v4032_v13  ;;  %v4033_v7 = vunpack.i.l.bf16 %v4032_v13 }
0x1444   :  { %3682 = vmatpush1.bf16.msra.mxu0 %v4697_v34 }
0x1445   :  { %3684 = vmatprep.subr.bf16.mxu0 %v4702_v55  ;;  %v1976_v31 = vsel %vm858_vm2, %v1975_v3, %v4033_v7 }
0x1446   :  { %v1977_v11 = vsel %vm1885_vm4, %v1976_v31, %v4034_v30  ;;  %v1873_v31 = vld [vmem:[%s5293_s7] sm:$0x3] }
0x1447   :  { %2043 = vmatmul.mubr.f32.vlgmr.msra.gmra.mrb[20].mxu1 %v1977_v11  ;;  %v5118_v16 = vrot.slane %v1873_v31, %v74_v49  ;;  %v5128_v23 = vrot.slane %v1873_v31, %v78_v59 }
0x1448   :  { %3686 = vmatpush1.bf16.msra.mxu0 %v4720_v0  ;;  %3710 = vmatpush1.bf16.msra.mxu1 %v4676_v20 }
0x1449   :  { %3688 = vmatprep.subr.bf16.mxu0 %v4725_v5  ;;  %3712 = vmatprep.subr.bf16.mxu1 %v4678_v26 }
0x144a   :  { %2202 = vmatprep.mubr.f32.mxu1 %v4175_v4 }
0x144c   :  { %3690 = vmatpush1.bf16.msra.mxu0 %v4741_v28  ;;  %3714 = vmatpush1.bf16.msra.mxu1 %v4697_v34 }
0x144d   :  { %3692 = vmatprep.subr.bf16.mxu0 %v4745_v8  ;;  %3716 = vmatprep.subr.bf16.mxu1 %v4702_v55 }
0x1450   :  { %3694 = vmatpush1.bf16.msra.mxu0 %v4761_v14  ;;  %3718 = vmatpush1.bf16.msra.mxu1 %v4720_v0 }
0x1451   :  { %3696 = vmatprep.subr.bf16.mxu0 %v4765_v15  ;;  %3720 = vmatprep.subr.bf16.mxu1 %v4725_v5 }
0x1454   :  { %3698 = vmatpush1.bf16.msra.mxu0 %v4781_v21  ;;  %3722 = vmatpush1.bf16.msra.mxu1 %v4741_v28 }
0x1455   :  { %3700 = vmatprep.subr.bf16.mxu0 %v4785_v22  ;;  %3724 = vmatprep.subr.bf16.mxu1 %v4745_v8 }
0x1458   :  { %3702 = vmatpush1.bf16.msra.mxu0 %v4801_v39  ;;  %3726 = vmatpush1.bf16.msra.mxu1 %v4761_v14 }
0x1459   :  { %3704 = vmatprep.subr.bf16.mxu0 %v4805_v41  ;;  %3728 = vmatprep.subr.bf16.mxu1 %v4765_v15 }
0x145c   :  { %3706 = vmatpush1.bf16.msra.mxu0 %v4818_v45  ;;  %3730 = vmatpush1.bf16.msra.mxu1 %v4781_v21 }
0x145d   :  { %3732 = vmatprep.subr.bf16.mxu1 %v4785_v22  ;;  %3740 = vmatprep.subr.bf16.mxu0 %v4665_v50 }
0x145f   :  { %2123 = vmatmul.mubr.f32.vlgmr.msra.gmra.mrb[22].mxu0 %v2057_v29 }
0x1460   :  { %3734 = vmatpush1.bf16.msra.mxu1 %v4801_v39  ;;  %3742 = vmatpush1.bf16.msra.mxu0 %v4676_v20 }
0x1461   :  { %3736 = vmatprep.subr.bf16.mxu1 %v4805_v41  ;;  %3744 = vmatprep.subr.bf16.mxu0 %v4678_v26 }
0x1462   :  { %2282 = vmatprep.mubr.f32.mxu0 %v4175_v4 }
0x1464   :  { %3738 = vmatpush1.bf16.msra.mxu1 %v4818_v45  ;;  %3746 = vmatpush1.bf16.msra.mxu0 %v4697_v34 }
0x1465   :  { %3748 = vmatprep.subr.bf16.mxu0 %v4702_v55  ;;  %3772 = vmatprep.subr.bf16.mxu1 %v4665_v50 }
0x1467   :  { %2203 = vmatmul.mubr.f32.vlgmr.msra.gmra.mrb[22].mxu1 %v2137_v17 }
0x1468   :  { %3750 = vmatpush1.bf16.msra.mxu0 %v4720_v0  ;;  %3774 = vmatpush1.bf16.msra.mxu1 %v4676_v20 }
0x1469   :  { %3752 = vmatprep.subr.bf16.mxu0 %v4725_v5  ;;  %3776 = vmatprep.subr.bf16.mxu1 %v4678_v26 }
0x146a   :  { %2356 = vmatprep.mubr.f32.mxu1 %v4175_v4 }
0x146c   :  { %3754 = vmatpush1.bf16.msra.mxu0 %v4741_v28  ;;  %3778 = vmatpush1.bf16.msra.mxu1 %v4697_v34 }
0x146d   :  { %3756 = vmatprep.subr.bf16.mxu0 %v4745_v8  ;;  %3780 = vmatprep.subr.bf16.mxu1 %v4702_v55 }
0x1470   :  { %3758 = vmatpush1.bf16.msra.mxu0 %v4761_v14  ;;  %3782 = vmatpush1.bf16.msra.mxu1 %v4720_v0 }
0x1471   :  { %3760 = vmatprep.subr.bf16.mxu0 %v4765_v15  ;;  %3784 = vmatprep.subr.bf16.mxu1 %v4725_v5 }
0x1474   :  { %3762 = vmatpush1.bf16.msra.mxu0 %v4781_v21  ;;  %3786 = vmatpush1.bf16.msra.mxu1 %v4741_v28 }
0x1475   :  { %3764 = vmatprep.subr.bf16.mxu0 %v4785_v22  ;;  %3788 = vmatprep.subr.bf16.mxu1 %v4745_v8 }
0x1478   :  { %3766 = vmatpush1.bf16.msra.mxu0 %v4801_v39  ;;  %3790 = vmatpush1.bf16.msra.mxu1 %v4761_v14 }
0x1479   :  { %3768 = vmatprep.subr.bf16.mxu0 %v4805_v41  ;;  %3792 = vmatprep.subr.bf16.mxu1 %v4765_v15 }
0x147c   :  { %3770 = vmatpush1.bf16.msra.mxu0 %v4818_v45  ;;  %3794 = vmatpush1.bf16.msra.mxu1 %v4781_v21 }
0x147d   :  { %3796 = vmatprep.subr.bf16.mxu1 %v4785_v22  ;;  %3804 = vmatprep.subr.bf16.mxu0 %v4665_v50 }
0x147f   :  { %2283 = vmatmul.mubr.f32.vlgmr.msra.gmra.mrb[24].mxu0 %v2217_v24 }
0x1480   :  { %3798 = vmatpush1.bf16.msra.mxu1 %v4801_v39  ;;  %3806 = vmatpush1.bf16.msra.mxu0 %v4676_v20 }
0x1481   :  { %3800 = vmatprep.subr.bf16.mxu1 %v4805_v41  ;;  %3808 = vmatprep.subr.bf16.mxu0 %v4678_v26 }
0x1482   :  { %2430 = vmatprep.mubr.f32.mxu0 %v4175_v4 }
0x1484   :  { %3802 = vmatpush1.bf16.msra.mxu1 %v4818_v45  ;;  %3810 = vmatpush1.bf16.msra.mxu0 %v4697_v34 }
0x1485   :  { %3812 = vmatprep.subr.bf16.mxu0 %v4702_v55  ;;  %3836 = vmatprep.subr.bf16.mxu1 %v4665_v50  ;;  %v4985_v50 = vpack.c.bf16 %v1860_v9, %v1858_v40 }
0x1487   :  { %2357 = vmatmul.mubr.f32.vlgmr.msra.gmra.mrb[24].mxu1 %v2291_v60 }
0x1488   :  { %3814 = vmatpush1.bf16.msra.mxu0 %v4720_v0  ;;  %3838 = vmatpush1.bf16.msra.mxu1 %v4676_v20  ;;  %v1857_v20 = vld [vmem:[%s5292_s6] sm:$0xff] }
0x1489   :  { %3816 = vmatprep.subr.bf16.mxu0 %v4725_v5  ;;  %3840 = vmatprep.subr.bf16.mxu1 %v4678_v26  ;;  %v1859_v26 = vld [vmem:[%s5292_s6 + $0x10] sm:$0xff] }
0x148a   :  { %2504 = vmatprep.mubr.f32.mxu1 %v4175_v4 }
0x148c   :  { %3818 = vmatpush1.bf16.msra.mxu0 %v4741_v28  ;;  %3842 = vmatpush1.bf16.msra.mxu1 %v4697_v34  ;;  %v2363_v34 = vsel %vm1882_vm3, %v4607_v25, %v4545_v12  ;;  %v1861_v25 = vld [vmem:[%s5292_s6 + $0x20] sm:$0xff] }
0x148d   :  { %3820 = vmatprep.subr.bf16.mxu0 %v4745_v8  ;;  %3844 = vmatprep.subr.bf16.mxu1 %v4702_v55  ;;  %v1862_v55 = vld [vmem:[%s5292_s6 + $0x28] sm:$0xff] }
0x1490   :  { %3822 = vmatpush1.bf16.msra.mxu0 %v4761_v14  ;;  %3846 = vmatpush1.bf16.msra.mxu1 %v4720_v0  ;;  %v1864_v0 = vld [vmem:[%s5292_s6 + $0x38] sm:$0xff] }
0x1491   :  { %3824 = vmatprep.subr.bf16.mxu0 %v4765_v15  ;;  %3848 = vmatprep.subr.bf16.mxu1 %v4725_v5  ;;  %v2364_v5 = vsel %vm858_vm2, %v2363_v34, %v4028_v52  ;;  %v5011_v12 = vpack.c.bf16 %v1864_v0, %v1862_v55 }
0x1494   :  { %3826 = vmatpush1.bf16.msra.mxu0 %v4781_v21  ;;  %3850 = vmatpush1.bf16.msra.mxu1 %v4741_v28  ;;  %v5007_v28 = vpack.c.bf16 %v1859_v26, %v1857_v20 }
0x1495   :  { %3828 = vmatprep.subr.bf16.mxu0 %v4785_v22  ;;  %3852 = vmatprep.subr.bf16.mxu1 %v4745_v8  ;;  %v1863_v8 = vld [vmem:[%s5292_s6 + $0x30] sm:$0xff] }
0x1498   :  { %3830 = vmatpush1.bf16.msra.mxu0 %v4801_v39  ;;  %3854 = vmatpush1.bf16.msra.mxu1 %v4761_v14  ;;  %v2365_v14 = vsel %vm1885_vm4, %v2364_v5, %v4029_v47 }
0x1499   :  { %3832 = vmatprep.subr.bf16.mxu0 %v4805_v41  ;;  %3856 = vmatprep.subr.bf16.mxu1 %v4765_v15  ;;  %v1866_v15 = vld [vmem:[%s5292_s6 + $0x48] sm:$0xff] }
0x149c   :  { %3834 = vmatpush1.bf16.msra.mxu0 %v4818_v45  ;;  %3858 = vmatpush1.bf16.msra.mxu1 %v4781_v21  ;;  %v1868_v21 = vld [vmem:[%s5292_s6 + $0x58] sm:$0xff] }
0x149d   :  { %3860 = vmatprep.subr.bf16.mxu1 %v4785_v22  ;;  %3868 = vmatprep.subr.bf16.mxu0 %v4985_v50  ;;  %v5030_v22 = vpack.c.bf16 %v1863_v8, %v1861_v25  ;;  %v5034_v61 = vpack.c.bf16 %v1868_v21, %v1866_v15 }
0x149f   :  { %2431 = vmatmul.mubr.f32.vlgmr.msra.gmra.mrb[26].mxu0 %v2365_v14 }
0x14a0   :  { %3862 = vmatpush1.bf16.msra.mxu1 %v4801_v39  ;;  %3870 = vmatpush1.bf16.msra.mxu0 %v5007_v28  ;;  %v1870_v39 = vld [vmem:[%s5292_s6 + $0x68] sm:$0xff] }
0x14a1   :  { %3864 = vmatprep.subr.bf16.mxu1 %v4805_v41  ;;  %3872 = vmatprep.subr.bf16.mxu0 %v5011_v12  ;;  %v1872_v41 = vld [vmem:[%s5292_s6 + $0x78] sm:$0xff] }
0x14a2   :  { %2575 = vmatprep.mubr.f32.mxu0 %v4175_v4  ;;  %v5054_v53 = vpack.c.bf16 %v1872_v41, %v1870_v39 }
0x14a4   :  { %3866 = vmatpush1.bf16.msra.mxu1 %v4818_v45  ;;  %3874 = vmatpush1.bf16.msra.mxu0 %v5030_v22  ;;  %v5065_v45 = vpack.c.bf16 %v1871_v32, %v1869_v27 }
0x14a5   :  { %3876 = vmatprep.subr.bf16.mxu0 %v5034_v61  ;;  %3884 = vmatprep.subr.bf16.mxu1 %v4985_v50 }
0x14a7   :  { %2505 = vmatmul.mubr.f32.vlgmr.msra.gmra.mrb[26].mxu1 %v4838_v33 }
0x14a8   :  { %3878 = vmatpush1.bf16.msra.mxu0 %v5051_v42  ;;  %3886 = vmatpush1.bf16.msra.mxu1 %v5007_v28 }
0x14a9   :  { %3880 = vmatprep.subr.bf16.mxu0 %v5054_v53  ;;  %3888 = vmatprep.subr.bf16.mxu1 %v5011_v12 }
0x14aa   :  { %2677 = vmatprep.mubr.f32.mxu1 %v4175_v4 }
0x14ac   :  { %3882 = vmatpush1.bf16.msra.mxu0 %v5065_v45  ;;  %3890 = vmatpush1.bf16.msra.mxu1 %v5030_v22 }
0x14ad   :  { %3892 = vmatprep.subr.bf16.mxu1 %v5034_v61  ;;  %3900 = vmatprep.subr.bf16.mxu0 %v4985_v50 }
0x14af   :  { %2576 = vmatmul.mubr.f32.vlgmr.msra.gmra.mrb[28].mxu0 %v4175_v4 }
0x14b0   :  { %3894 = vmatpush1.bf16.msra.mxu1 %v5051_v42  ;;  %3902 = vmatpush1.bf16.msra.mxu0 %v5007_v28 }
0x14b1   :  { %3896 = vmatprep.subr.bf16.mxu1 %v5054_v53  ;;  %3904 = vmatprep.subr.bf16.mxu0 %v5011_v12 }
0x14b2   :  { %2773 = vmatprep.mubr.f32.mxu0 %v4175_v4 }
0x14b4   :  { %3898 = vmatpush1.bf16.msra.mxu1 %v5065_v45  ;;  %3906 = vmatpush1.bf16.msra.mxu0 %v5030_v22 }
0x14b5   :  { %3908 = vmatprep.subr.bf16.mxu0 %v5034_v61  ;;  %3916 = vmatprep.subr.bf16.mxu1 %v4985_v50 }
0x14b8   :  { %3910 = vmatpush1.bf16.msra.mxu0 %v5051_v42 }
0x14b9   :  { %3912 = vmatprep.subr.bf16.mxu0 %v5054_v53 }
0x14bc   :  { %3914 = vmatpush1.bf16.msra.mxu0 %v5065_v45 }
0x14bd   :  { %3932 = vmatprep.subr.bf16.mxu0 %v4985_v50 }
0x1512   :  { %v1964_v44 = vpop.f32.mrb[20].mxu0 }
0x1513   :  { %v1966_v33 = vpop.f32.mrb[21].mxu0  ;;  %v1965_v46 = vadd.f32 %v1964_v44, %v5118_v16 }
0x1514   :  { %v1967_v43 = vadd.f32 %v1966_v33, %v5128_v23 }
0x151a   :  { %v2044_v54 = vpop.f32.mrb[20].mxu1 }
0x151b   :  { %v2046_v36 = vpop.f32.mrb[21].mxu1  ;;  %v2045_v59 = vadd.f32 %v2044_v54, %v5118_v16 }
0x151c   :  { %v2047_v15 = vadd.f32 %v2046_v36, %v5128_v23 }
0x1532   :  { %v5089_v56 = vpop.f32.mrb[22].mxu0 }
0x1533   :  { %v5091_v57 = vpop.f32.mrb[23].mxu0  ;;  %v2125_v33 = vadd.f32 %v5089_v56, %v5118_v16 }
0x153a   :  { %v5093_v35 = vpop.f32.mrb[22].mxu1 }
0x153b   :  { %v5095_v62 = vpop.f32.mrb[23].mxu1 }
0x1552   :  { %v5097_v63 = vpop.f32.mrb[24].mxu0 }
0x1553   :  { %v5099_v6 = vpop.f32.mrb[25].mxu0 }
0x155a   :  { %v5101_v13 = vpop.f32.mrb[24].mxu1 }
0x155b   :  { %v5103_v30 = vpop.f32.mrb[25].mxu1 }
0x1572   :  { %v5105_v7 = vpop.f32.mrb[26].mxu0 }
0x1573   :  { %v5107_v3 = vpop.f32.mrb[27].mxu0 }
0x157a   :  { %v5112_v11 = vpop.f32.mrb[26].mxu1 }
0x157b   :  { %v5114_v10 = vpop.f32.mrb[27].mxu1 }
0x1582   :  { %v2577_v29 = vpop.f32.mrb[28].mxu0 }
0x1583   :  { %v2582_v47 = vadd.f32 %v2577_v29, %v1965_v46  ;;  %v2579_v52 = vpop.f32.mrb[29].mxu0 }
0x1584   :  { %v2595_v49 = vadd.f32 %v5124_v18, %v2579_v52 }
0x1585   :  { %v3431_v58 = vmul.f32 -1.442695, %v2582_v47 }
0x1587   :  { %4097 = vpow2.f32 %v3431_v58 }
0x1591   :  { %v4098_v1 = vpop.eup %4097 }
0x1592   :  { %v2586_v17 = vadd.f32 1.0, %v4098_v1  ;;  %v2127_v1 = vadd.f32 %v5091_v57, %v5128_v23  ;;  %v2205_v57 = vadd.f32 %v5093_v35, %v5118_v16 }
0x1594   :  { %4099 = vrcp.f32 %v2586_v17 }
0x159e   :  { %v4100_v2 = vpop.eup %4099 }
0x159f   :  { %v2596_v24 = vmul.f32 %v4100_v2, %v2595_v49 }
0x15a1   :  { %v2597_v51 = vadd.f32 %v2596_v24, %v1967_v43 }
0x15a3   :  { %4101 = vtanh.f32 %v2597_v51 }
0x15ad   :  { %v4102_v37 = vpop.eup %4101 }
0x15ae   :  { %v2599_v60 = vsub.f32 0.0, %v4102_v37 }
0x15b0   :  { %2601 = vrot.lane.b32.xlu1 %v2599_v60, %s4181_s3 }
0x1622   :  { %v2602_v40 = vpop.permute.xlu1 %2601 }
0x1623   :  { %v2604_v9 = vmul.f32 %v4100_v2, %v2602_v40 }
0x1625   :  { %2606 = vrot.lane.b32.xlu0 %v2604_v9, %s4181_s3 }
0x1697   :  { %v2607_v20 = vpop.permute.xlu0 %2606 }
0x1698   :  { %v2609_v48 = vadd.f32 %v4102_v37, %v2607_v20 }
0x169a   :  { %3433 = vmatmul.mubr.msk.f32.vlgmr.msra.gmra.mrb[28].mxu1 %vm858_vm2, %v2609_v48 }
0x169b   :  { %3918 = vmatpush1.bf16.msra.mxu1 %v5007_v28  ;;  %2869 = vmatprep.mubr.f32.mxu1 %v4175_v4 }
0x169c   :  { %3920 = vmatprep.subr.bf16.mxu1 %v5011_v12 }
0x169f   :  { %3922 = vmatpush1.bf16.msra.mxu1 %v5030_v22 }
0x16a0   :  { %3924 = vmatprep.subr.bf16.mxu1 %v5034_v61 }
0x16a3   :  { %3926 = vmatpush1.bf16.msra.mxu1 %v5051_v42 }
0x16a4   :  { %3928 = vmatprep.subr.bf16.mxu1 %v5054_v53 }
0x16a7   :  { %3930 = vmatpush1.bf16.msra.mxu1 %v5065_v45 }
0x16a8   :  { %3948 = vmatprep.subr.bf16.mxu1 %v4985_v50 }
0x176d   :  { %v2679_v26 = vpop.f32.mrb[28].mxu1 }
0x176e   :  { %v2684_v34 = vadd.f32 %v2679_v26, %v2045_v59  ;;  %v2681_v55 = vpop.f32.mrb[29].mxu1 }
0x176f   :  { %v2691_v8 = vadd.f32 %v5124_v18, %v2681_v55  ;;  %v2207_v55 = vadd.f32 %v5095_v62, %v5128_v23  ;;  %v2285_v62 = vadd.f32 %v5097_v63, %v5118_v16 }
0x1770   :  { %v3434_v0 = vmul.f32 -1.442695, %v2684_v34 }
0x1772   :  { %4103 = vpow2.f32 %v3434_v0 }
0x177c   :  { %v4104_v5 = vpop.eup %4103 }
0x177d   :  { %v2688_v25 = vadd.f32 1.0, %v4104_v5 }
0x177f   :  { %4105 = vrcp.f32 %v2688_v25 }
0x1789   :  { %v4106_v14 = vpop.eup %4105 }
0x178a   :  { %v2692_v21 = vmul.f32 %v4106_v14, %v2691_v8 }
0x178c   :  { %v2693_v38 = vadd.f32 %v2692_v21, %v2047_v15 }
0x178e   :  { %4107 = vtanh.f32 %v2693_v38 }
0x1798   :  { %v4108_v19 = vpop.eup %4107 }
0x1799   :  { %v2695_v39 = vsub.f32 %v2609_v48, %v4108_v19 }
0x179b   :  { %2697 = vrot.lane.b32.xlu1 %v2695_v39, %s4181_s3 }
0x180d   :  { %v2698_v41 = vpop.permute.xlu1 %2697 }
0x180e   :  { %v2700_v27 = vmul.f32 %v4106_v14, %v2698_v41 }
0x1810   :  { %2702 = vrot.lane.b32.xlu0 %v2700_v27, %s4181_s3 }
0x1882   :  { %v2703_v32 = vpop.permute.xlu0 %2702 }
0x1883   :  { %v2705_v44 = vadd.f32 %v4108_v19, %v2703_v32 }
0x1885   :  { %3435 = vmatmul.mubr.msk.f32.vlgmr.msra.gmra.mrb[30].mxu0 %vm858_vm2, %v2705_v44 }
0x1886   :  { %3934 = vmatpush1.bf16.msra.mxu0 %v5007_v28  ;;  %2965 = vmatprep.mubr.f32.mxu0 %v4175_v4 }
0x1887   :  { %3936 = vmatprep.subr.bf16.mxu0 %v5011_v12 }
0x188a   :  { %3938 = vmatpush1.bf16.msra.mxu0 %v5030_v22 }
0x188b   :  { %3940 = vmatprep.subr.bf16.mxu0 %v5034_v61 }
0x188e   :  { %3942 = vmatpush1.bf16.msra.mxu0 %v5051_v42 }
0x188f   :  { %3944 = vmatprep.subr.bf16.mxu0 %v5054_v53 }
0x1892   :  { %3946 = vmatpush1.bf16.msra.mxu0 %v5065_v45 }
0x1893   :  { %3964 = vmatprep.subr.bf16.mxu0 %v4985_v50 }
0x1958   :  { %v2775_v54 = vpop.f32.mrb[30].mxu0 }
0x1959   :  { %v2780_v36 = vadd.f32 %v2775_v54, %v2125_v33  ;;  %v2777_v31 = vpop.f32.mrb[31].mxu0  ;;  %v2287_v33 = vadd.f32 %v5099_v6, %v5128_v23  ;;  %v2359_v6 = vadd.f32 %v5101_v13, %v5118_v16 }
0x195a   :  { %v2787_v52 = vadd.f32 %v5124_v18, %v2777_v31 }
0x195b   :  { %v3436_v46 = vmul.f32 -1.442695, %v2780_v36 }
0x195d   :  { %4109 = vpow2.f32 %v3436_v46 }
0x1967   :  { %v4110_v29 = vpop.eup %4109 }
0x1968   :  { %v2784_v47 = vadd.f32 1.0, %v4110_v29 }
0x196a   :  { %4111 = vrcp.f32 %v2784_v47 }
0x1974   :  { %v4112_v58 = vpop.eup %4111 }
0x1975   :  { %v2788_v17 = vmul.f32 %v4112_v58, %v2787_v52 }
0x1977   :  { %v2789_v49 = vadd.f32 %v2788_v17, %v2127_v1 }
0x1979   :  { %4113 = vtanh.f32 %v2789_v49 }
0x1983   :  { %v4114_v2 = vpop.eup %4113 }
0x1984   :  { %v2791_v43 = vsub.f32 %v2705_v44, %v4114_v2 }
0x1986   :  { %2793 = vrot.lane.b32.xlu1 %v2791_v43, %s4181_s3 }
0x19f8   :  { %v2794_v56 = vpop.permute.xlu1 %2793 }
0x19f9   :  { %v2796_v24 = vmul.f32 %v4112_v58, %v2794_v56 }
0x19fb   :  { %2798 = vrot.lane.b32.xlu0 %v2796_v24, %s4181_s3 }
0x1a6d   :  { %v2799_v51 = vpop.permute.xlu0 %2798 }
0x1a6e   :  { %v5166_v37 = vadd.f32 %v4114_v2, %v2799_v51 }
0x1a70   :  { %3437 = vmatmul.mubr.msk.f32.vlgmr.msra.gmra.mrb[30].mxu1 %vm858_vm2, %v5166_v37 }
0x1a71   :  { %3950 = vmatpush1.bf16.msra.mxu1 %v5007_v28  ;;  %3061 = vmatprep.mubr.f32.mxu1 %v4175_v4 }
0x1a72   :  { %3952 = vmatprep.subr.bf16.mxu1 %v5011_v12 }
0x1a75   :  { %3954 = vmatpush1.bf16.msra.mxu1 %v5030_v22 }
0x1a76   :  { %3956 = vmatprep.subr.bf16.mxu1 %v5034_v61 }
0x1a79   :  { %3958 = vmatpush1.bf16.msra.mxu1 %v5051_v42 }
0x1a7a   :  { %3960 = vmatprep.subr.bf16.mxu1 %v5054_v53 }
0x1a7d   :  { %3962 = vmatpush1.bf16.msra.mxu1 %v5065_v45 }
0x1a7e   :  { %3980 = vmatprep.subr.bf16.mxu1 %v4985_v50 }
0x1b43   :  { %v2871_v60 = vpop.f32.mrb[30].mxu1 }
0x1b44   :  { %v2876_v40 = vadd.f32 %v2871_v60, %v2205_v57  ;;  %v2873_v9 = vpop.f32.mrb[31].mxu1 }
0x1b45   :  { %v2883_v26 = vadd.f32 %v5124_v18, %v2873_v9 }
0x1b46   :  { %v3438_v20 = vmul.f32 -1.442695, %v2876_v40 }
0x1b48   :  { %4115 = vpow2.f32 %v3438_v20 }
0x1b52   :  { %v4116_v48 = vpop.eup %4115 }
0x1b53   :  { %v2880_v59 = vadd.f32 1.0, %v4116_v48 }
0x1b55   :  { %4117 = vrcp.f32 %v2880_v59 }
0x1b5f   :  { %v4118_v34 = vpop.eup %4117 }
0x1b60   :  { %v2884_v0 = vmul.f32 %v4118_v34, %v2883_v26  ;;  %v2435_v26 = vadd.f32 %v5107_v3, %v5128_v23 }
0x1b62   :  { %v2885_v5 = vadd.f32 %v2884_v0, %v2207_v55 }
0x1b64   :  { %4119 = vtanh.f32 %v2885_v5 }
0x1b6e   :  { %v4120_v50 = vpop.eup %4119 }
0x1b6f   :  { %v2887_v35 = vsub.f32 %v5166_v37, %v4120_v50 }
0x1b71   :  { %2889 = vrot.lane.b32.xlu1 %v2887_v35, %s4181_s3 }
0x1be3   :  { %v2890_v25 = vpop.permute.xlu1 %2889 }
0x1be4   :  { %v2892_v8 = vmul.f32 %v4118_v34, %v2890_v25 }
0x1be6   :  { %2894 = vrot.lane.b32.xlu0 %v2892_v8, %s4181_s3  ;;  %v2507_v8 = vadd.f32 %v5112_v11, %v5118_v16  ;;  %v3448_v11 = vld [vmem:[%s5296_s10] ss:$0 sm:$0xff] }
0x1c58   :  { %v2895_v14 = vpop.permute.xlu0 %2894 }
0x1c59   :  { %v5187_v15 = vadd.f32 %v4120_v50, %v2895_v14 }
0x1c5b   :  { %3439 = vmatmul.mubr.msk.f32.vlgmr.msra.gmra.mrb[32].mxu0 %vm858_vm2, %v5187_v15 }
0x1c5c   :  { %3966 = vmatpush1.bf16.msra.mxu0 %v5007_v28  ;;  %3157 = vmatprep.mubr.f32.mxu0 %v4175_v4 }
0x1c5d   :  { %3968 = vmatprep.subr.bf16.mxu0 %v5011_v12 }
0x1c60   :  { %3970 = vmatpush1.bf16.msra.mxu0 %v5030_v22 }
0x1c61   :  { %3972 = vmatprep.subr.bf16.mxu0 %v5034_v61 }
0x1c64   :  { %3974 = vmatpush1.bf16.msra.mxu0 %v5051_v42 }
0x1c65   :  { %3976 = vmatprep.subr.bf16.mxu0 %v5054_v53 }
0x1c68   :  { %3978 = vmatpush1.bf16.msra.mxu0 %v5065_v45 }
0x1d2e   :  { %v2967_v21 = vpop.f32.mrb[32].mxu0 }
0x1d2f   :  { %v2972_v38 = vadd.f32 %v2967_v21, %v2285_v62  ;;  %v2969_v19 = vpop.f32.mrb[33].mxu0 }
0x1d30   :  { %v2979_v32 = vadd.f32 %v5124_v18, %v2969_v19 }
0x1d31   :  { %v3440_v39 = vmul.f32 -1.442695, %v2972_v38 }
0x1d33   :  { %4121 = vpow2.f32 %v3440_v39 }
0x1d3d   :  { %v4122_v41 = vpop.eup %4121 }
0x1d3e   :  { %v2976_v27 = vadd.f32 1.0, %v4122_v41 }
0x1d40   :  { %4123 = vrcp.f32 %v2976_v27  ;;  %v2509_v27 = vadd.f32 %v5114_v10, %v5128_v23 }
0x1d4a   :  { %v4124_v44 = vpop.eup %4123 }
0x1d4b   :  { %v2980_v54 = vmul.f32 %v4124_v44, %v2979_v32 }
0x1d4d   :  { %v2981_v36 = vadd.f32 %v2980_v54, %v2287_v33 }
0x1d4f   :  { %4125 = vtanh.f32 %v2981_v36 }
0x1d59   :  { %v4126_v31 = vpop.eup %4125 }
0x1d5a   :  { %v2983_v63 = vsub.f32 %v5187_v15, %v4126_v31 }
0x1d5c   :  { %2985 = vrot.lane.b32.xlu1 %v2983_v63, %s4181_s3 }
0x1dce   :  { %v2986_v46 = vpop.permute.xlu1 %2985 }
0x1dcf   :  { %v2988_v29 = vmul.f32 %v4124_v44, %v2986_v46 }
0x1dd1   :  { %2990 = vrot.lane.b32.xlu0 %v2988_v29, %s4181_s3 }
0x1e43   :  { %v2991_v47 = vpop.permute.xlu0 %2990 }
0x1e44   :  { %v5207_v52 = vadd.f32 %v4126_v31, %v2991_v47 }
0x1e46   :  { %3441 = vmatmul.mubr.msk.f32.vlgmr.msra.gmra.mrb[32].mxu1 %vm858_vm2, %v5207_v52 }
0x1e47   :  { %3982 = vmatpush1.bf16.msra.mxu1 %v5007_v28  ;;  %3253 = vmatprep.mubr.f32.mxu1 %v4175_v4 }
0x1e48   :  { %3984 = vmatprep.subr.bf16.mxu1 %v5011_v12 }
0x1e4b   :  { %3986 = vmatpush1.bf16.msra.mxu1 %v5030_v22 }
0x1e4c   :  { %3988 = vmatprep.subr.bf16.mxu1 %v5034_v61 }
0x1e4f   :  { %3990 = vmatpush1.bf16.msra.mxu1 %v5051_v42  ;;  %v2361_v42 = vadd.f32 %v5103_v30, %v5128_v23  ;;  %v2433_v30 = vadd.f32 %v5105_v7, %v5118_v16 }
0x1e50   :  { %3992 = vmatprep.subr.bf16.mxu1 %v5054_v53 }
0x1e53   :  { %3994 = vmatpush1.bf16.msra.mxu1 %v5065_v45 }
0x1f19   :  { %v3063_v58 = vpop.f32.mrb[32].mxu1 }
0x1f1a   :  { %v3068_v1 = vadd.f32 %v3063_v58, %v2359_v6  ;;  %v3065_v28 = vpop.f32.mrb[33].mxu1  ;;  %v4186_v58 = vmov 0  }
0x1f1b   :  { %v3075_v22 = vadd.f32 %v5124_v18, %v3065_v28  ;;  %4035 = vset.pattern.permute.xlu1 %v4186_v58  ;;  %4036 = vset.pattern.permute.xlu0 %v4186_v58 }
0x1f1c   :  { %v3442_v17 = vmul.f32 -1.442695, %v3068_v1  ;;  %v3447_v1 = vld [vmem:[%s5295_s9] ss:$0 sm:$0xff]  ;;  %s4187_s9 = smov [#allocation3]  }
0x1f1d   :  { %v3319_v28 = vmul.f32 %v3447_v1, %v5207_v52 }
0x1f1e   :  { %4127 = vpow2.f32 %v3442_v17 }
0x1f28   :  { %v4128_v4 = vpop.eup %4127 }
0x1f29   :  { %v3072_v12 = vadd.f32 1.0, %v4128_v4 }
0x1f2b   :  { %4129 = vrcp.f32 %v3072_v12 }
0x1f35   :  { %v4130_v61 = vpop.eup %4129 }
0x1f36   :  { %v3076_v53 = vmul.f32 %v4130_v61, %v3075_v22 }
0x1f38   :  { %v3077_v49 = vadd.f32 %v3076_v53, %v2361_v42 }
0x1f3a   :  { %4131 = vtanh.f32 %v3077_v49 }
0x1f44   :  { %v4132_v45 = vpop.eup %4131 }
0x1f45   :  { %v3079_v13 = vsub.f32 %v5207_v52, %v4132_v45 }
0x1f47   :  { %3081 = vrot.lane.b32.xlu1 %v3079_v13, %s4181_s3 }
0x1fb9   :  { %v3082_v2 = vpop.permute.xlu1 %3081 }
0x1fba   :  { %v3084_v43 = vmul.f32 %v4130_v61, %v3082_v2 }
0x1fbc   :  { %3086 = vrot.lane.b32.xlu0 %v3084_v43, %s4181_s3  ;;  %v3309_v43 = vmul.f32 %v3447_v1, %v5187_v15 }
0x202e   :  { %v3087_v56 = vpop.permute.xlu0 %3086 }
0x202f   :  { %v5227_v24 = vadd.f32 %v4132_v45, %v3087_v56 }
0x2031   :  { %3443 = vmatmul.mubr.msk.f32.vlgmr.msra.gmra.mrb[34].mxu0 %vm858_vm2, %v5227_v24  ;;  %v3329_v61 = vmul.f32 %v3447_v1, %v5227_v24 }
0x2104   :  { %v3159_v51 = vpop.f32.mrb[34].mxu0 }
0x2105   :  { %v3164_v57 = vadd.f32 %v3159_v51, %v2433_v30  ;;  %v3161_v60 = vpop.f32.mrb[35].mxu0 }
0x2106   :  { %v3171_v48 = vadd.f32 %v5124_v18, %v3161_v60  ;;  %v3290_v60 = vmul.f32 %v3447_v1, %v5166_v37 }
0x2107   :  { %v3444_v40 = vmul.f32 -1.442695, %v3164_v57 }
0x2109   :  { %4133 = vpow2.f32 %v3444_v40 }
0x2113   :  { %v4134_v9 = vpop.eup %4133 }
0x2114   :  { %v3168_v20 = vadd.f32 1.0, %v4134_v9 }
0x2116   :  { %4135 = vrcp.f32 %v3168_v20 }
0x2120   :  { %v4136_v59 = vpop.eup %4135 }
0x2121   :  { %v3172_v34 = vmul.f32 %v4136_v59, %v3171_v48 }
0x2123   :  { %v3173_v55 = vadd.f32 %v3172_v34, %v2435_v26 }
0x2125   :  { %4137 = vtanh.f32 %v3173_v55 }
0x212f   :  { %v4138_v0 = vpop.eup %4137 }
0x2130   :  { %v3175_v7 = vsub.f32 %v5227_v24, %v4138_v0 }
0x2132   :  { %3177 = vrot.lane.b32.xlu1 %v3175_v7, %s4181_s3 }
0x21a4   :  { %v3178_v5 = vpop.permute.xlu1 %3177 }
0x21a5   :  { %v3180_v50 = vmul.f32 %v4136_v59, %v3178_v5  ;;  %v3449_v59 = vld [vmem:[#allocation2] ss:$0 sm:$0xff] }
0x21a7   :  { %3182 = vrot.lane.b32.xlu0 %v3180_v50, %s4181_s3 }
0x2219   :  { %v3183_v35 = vpop.permute.xlu0 %3182 }
0x221a   :  { %v3185_v25 = vadd.f32 %v4138_v0, %v3183_v35 }
0x221c   :  { %3445 = vmatmul.mubr.msk.f32.vlgmr.msra.gmra.mrb[34].mxu1 %vm858_vm2, %v3185_v25  ;;  %v3339_v45 = vmul.f32 %v3447_v1, %v3185_v25 }
0x22ef   :  { %v3255_v3 = vpop.f32.mrb[34].mxu1 }
0x22f0   :  { %v3260_v14 = vadd.f32 %v3255_v3, %v2507_v8  ;;  %v3257_v62 = vpop.f32.mrb[35].mxu1 }
0x22f1   :  { %v3267_v39 = vadd.f32 %v5124_v18, %v3257_v62 }
0x22f2   :  { %v3446_v21 = vmul.f32 -1.442695, %v3260_v14 }
0x22f4   :  { %4139 = vpow2.f32 %v3446_v21 }
0x22fe   :  { %v4140_v38 = vpop.eup %4139 }
0x22ff   :  { %v3264_v19 = vadd.f32 1.0, %v4140_v38 }
0x2301   :  { %4141 = vrcp.f32 %v3264_v19 }
0x230b   :  { %v4142_v41 = vpop.eup %4141 }
0x230c   :  { %v3268_v32 = vmul.f32 %v4142_v41, %v3267_v39 }
0x230e   :  { %v3269_v44 = vadd.f32 %v3268_v32, %v2509_v27 }
0x2310   :  { %4143 = vtanh.f32 %v3269_v44 }
0x231a   :  { %v4144_v33 = vpop.eup %4143 }
0x231b   :  { %v3271_v54 = vsub.f32 %v3185_v25, %v4144_v33 }
0x231d   :  { %3273 = vrot.lane.b32.xlu1 %v3271_v54, %s4181_s3 }
0x2321   :  { %3296 = vrot.lane.b32.xlu1 %v3448_v11, %s4185_s21 }
0x238f   :  { %v3274_v16 = vpop.permute.xlu1 %3273 }
0x2390   :  { %v3276_v36 = vmul.f32 %v4142_v41, %v3274_v16 }
0x2392   :  { %3278 = vrot.lane.b32.xlu0 %v3276_v36, %s4181_s3 }
0x2393   :  { %v3297_v18 = vpop.permute.xlu1 %3296 }
0x2394   :  { %v3310_v31 = vmul.f32 %v3297_v18, %v3185_v25  ;;  %v3320_v10 = vmul.f32 %v3297_v18, %v5227_v24  ;;  %v3330_v23 = vmul.f32 %v3297_v18, %v5207_v52  ;;  %v3340_v63 = vmul.f32 %v3297_v18, %v5187_v15 }
0x2395   :  { %v3350_v17 = vmul.f32 %v3297_v18, %v5166_v37 }
0x2396   :  { %3312 = vrot.lane.b32.xlu0 %v3310_v31, %s4173_s29 }
0x239a   :  { %3322 = vrot.lane.b32.xlu0 %v3320_v10, %s4173_s29 }
0x239e   :  { %3332 = vrot.lane.b32.xlu0 %v3330_v23, %s4173_s29 }
0x23a2   :  { %3342 = vrot.lane.b32.xlu0 %v3340_v63, %s4173_s29 }
0x2404   :  { %v3279_v46 = vpop.permute.xlu0 %3278 }
0x2405   :  { %v3281_v29 = vadd.f32 %v4144_v33, %v3279_v46 }
0x2407   :  { %v3299_v47 = vmul.f32 %v3297_v18, %v3281_v29  ;;  %v3349_v24 = vmul.f32 %v3447_v1, %v3281_v29 }
0x2408   :  { %v3313_v6 = vpop.permute.xlu0 %3312 }
0x2409   :  { %3301 = vrot.lane.b32.xlu0 %v3299_v47, %s4173_s29  ;;  %v3315_v56 = vadd.f32 %v3313_v6, %v3309_v43 }
0x240b   :  { %v3316_v30 = vsel %vm3305_vm5, %v3315_v56, 0.0 }
0x240c   :  { %v3323_v4 = vpop.permute.xlu0 %3322 }
0x240d   :  { %v3325_v12 = vadd.f32 %v3323_v4, %v3319_v28  ;;  %3352 = vrot.lane.b32.xlu0 %v3350_v17, %s4173_s29  ;;  %s3393_s29 = sshll.u32 %s4187_s9, 4  ;;  %s3394_s29 = int_to_ptr.vmem [resolvable:$true] %s3393_s29 }
0x240e   :  { %s4149_s22 = scalar_lea.vmem %s3394_s29, 32  ;;  %p4154_p1 = scmp.lt.s32.totalorder %s3394_s29, %s3394_s29 }
0x240f   :  { %v3326_v22 = vsel %vm3305_vm5, %v3325_v12, 0.0  ;;  %p4150_p0 = scmp.ne.s32.totalorder %s3394_s29, %s4149_s22  ;;  %p4155_p2 = scmp.lt.s32.totalorder %s4149_s22, %s4149_s22 }
0x2410   :  { %3327 = vadd.xlane.f32.xlu1 %v3326_v22  ;;  %v3333_v42 = vpop.permute.xlu0 %3332 }
0x2411   :  { %v3335_v53 = vadd.f32 %v3333_v42, %v3329_v61  ;;  %p4156_p3 = por %p4155_p2, %p4154_p1 }
0x2413   :  { %v3336_v49 = vsel %vm3305_vm5, %v3335_v53, 0.0  ;;  %p4157_p4 = pnand %p4156_p3, %p4150_p0 }
0x2414   :  { %3337 = vadd.xlane.f32.xlu1 %v3336_v49  ;;  %v3343_v13 = vpop.permute.xlu0 %3342 }
0x2415   :  { %v3345_v52 = vadd.f32 %v3343_v13, %v3339_v45 }
0x2417   :  { %v3346_v2 = vsel %vm3305_vm5, %v3345_v52, 0.0 }
0x2418   :  { %3347 = vadd.xlane.f32.xlu1 %v3346_v2 }
0x242c   :  { %3317 = vadd.xlane.f32.xlu0 %v3316_v30 }
0x247b   :  { %v3302_v51 = vpop.permute.xlu0 %3301 }
0x247c   :  { %v3304_v9 = vadd.f32 %v3302_v51, %v3290_v60 }
0x247e   :  { %v3306_v48 = vsel %vm3305_vm5, %v3304_v9, 0.0 }
0x247f   :  { %v3353_v57 = vpop.permute.xlu0 %3352 }
0x2480   :  { %v3355_v40 = vadd.f32 %v3353_v57, %v3349_v24 }
0x2482   :  { %v3356_v20 = vsel %vm3305_vm5, %v3355_v40, 0.0 }
0x2483   :  { %3357 = vadd.xlane.f32.xlu1 %v3356_v20 }
0x2487   :  { %3307 = vadd.xlane.f32.xlu1 %v3306_v48 }
0x2498   :  { %3375 = vperm.xlu1 %4035, %v3449_v59  }
0x249d   :  { %v3328_v15 = vpop.xlane.xlu1 %3327 }
0x24a1   :  { %v3338_v26 = vpop.xlane.xlu1 %3337 }
0x24a5   :  { %v3348_v34 = vpop.xlane.xlu1 %3347 }
0x24b9   :  { %v3318_v0 = vpop.xlane.xlu0 %3317 }
0x2510   :  { %v3358_v55 = vpop.xlane.xlu1 %3357 }
0x2514   :  { %v3308_v7 = vpop.xlane.xlu1 %3307 }
0x2515   :  { %v3360_v37 = vsel %vm3359_vm6, %v3308_v7, %v3318_v0 }
0x2516   :  { %v3362_v5 = vsel %vm3361_vm7, %v3360_v37, %v3328_v15 }
0x2517   :  { %v3364_v50 = vsel %vm3363_vm8, %v3362_v5, %v3338_v26 }
0x2518   :  { %v3376_v35 = vpop.permute.xlu1 %3375  ;;  %v3365_v25 = vsel %vm69_vm0, %v3364_v50, %v3348_v34 }
0x2519   :  { %v3367_v8 = vsel %vm3366_vm9, %v3365_v25, %v3358_v55 }
0x251a   :  { %v3378_v3 = vadd.f32 %v3376_v35, %v3367_v8 }
0x251c   :  { %v3450_v14 = vmul.f32 -1.442695, %v3378_v3 }
0x251e   :  { %4145 = vpow2.f32 %v3450_v14 }
0x2528   :  { %v4146_v62 = vpop.eup %4145 }
0x2529   :  { %v3382_v21 = vadd.f32 1.0, %v4146_v62 }
0x252b   :  { %4147 = vrcp.f32 %v3382_v21 }
0x2535   :  { %v4148_v38 = vpop.eup %4147 }
0x2536   :  { %3386 = vst.msk [vmem:[#allocation3] sm:$0x3] %vm3385_vm10, %v4148_v38 }
0x2537   :  { %4160 = shalt.err (!%p4157_p4)
}
0x2538   :  { %s4161_s24 = scalar_lea.hbm %s5298_s12, 32 }
0x2539   :  { %p4162_p5 = scmp.ne.s32.totalorder %s5298_s12, %s4161_s24  ;;  %p4165_p6 = scmp.lt.u32.totalorder %s4161_s24, %s5298_s12 }
0x253b   :  { %p4167_p7 = pnand %p4165_p6, %p4162_p5 }
0x253d   :  { %4170 = shalt.err (!%p4167_p7)
}
0x253e   :  { %3396 = dma.vmem_to_hbm [thread:$0]  %s3394_s29, 32, %s5298_s12, [#allocation4]  }
0x253f   :  { %4171 = dma.done.wait [#allocation4], 32  }
0x2540   :  { %4172 = vsyncadd [#allocation4], 4294967264 }
0x2541   :  { %3400 = vsyncpa [#allocation4], 1 }

</bundles_post_ra>
